<compile_context>
chip_gen: v6e
topology: v6e:2x2x1
jax: 0.10.0
libtpu: 0.0.40
codegen_flags: <defaults>
</compile_context>

<pallas_src>
import math
import functools

import jax
import jax.numpy as jnp
from jax.experimental import pallas as pl
from jax.experimental.pallas import tpu as pltpu


# ----------------------------- tiling helpers -----------------------------

def _tile_rows(m, target=256, multiple=8):
    """Row tile <= target that divides m, is a multiple of `multiple`, and (when
    possible) yields >= 2 grid steps so both v7x TensorCores get work."""
    if m <= multiple:
        return m
    cap = min(target, max(multiple, (m // 2) // multiple * multiple))
    t = (cap // multiple) * multiple
    while t >= multiple:
        if m % t == 0:
            return t
        t -= multiple
    return m


def _tile_lanes(n, target=512):
    """Lane tile <= target that divides n and is a multiple of 128 (or n itself)."""
    if n <= target:
        return n
    t = (target // 128) * 128
    while t >= 128:
        if n % t == 0:
            return t
        t -= 128
    return n


# ----------------------------- in-kernel helpers -----------------------------

def _ln(x, g, b, eps):
    mean = jnp.mean(x, axis=-1, keepdims=True)
    var = jnp.mean((x - mean) ** 2, axis=-1, keepdims=True)
    return (x - mean) * jax.lax.rsqrt(var + eps) * g + b


def _mha(q, k, v, mask, wo, n_heads, scale):
    """Multi-head attention with fused output projection.

    q: (Sq, D) f32, k/v: (Sk, D) f32, mask: bool broadcastable to (Sq, Sk),
    wo: (D, D) bf16.  Returns the output-projected context (Sq, D) f32.
    Each head's context is projected with its slice of Wo and accumulated, so no
    lane-wise concat / relayout is ever emitted."""
    Sq, D = q.shape
    dk = D // n_heads
    qb = q.astype(jnp.bfloat16)
    kb = k.astype(jnp.bfloat16)
    vb = v.astype(jnp.bfloat16)
    acc = jnp.zeros((Sq, D), jnp.float32)
    for h in range(n_heads):
        sl = slice(h * dk, (h + 1) * dk)
        s = jax.lax.dot_general(qb[:, sl], kb[:, sl], (((1,), (1,)), ((), ())),
                                preferred_element_type=jnp.float32) * scale
        s = jnp.where(mask, s, -1e9)
        s = s - jnp.max(s, axis=-1, keepdims=True)
        p = jnp.exp(s)
        p = p * pl.reciprocal(jnp.sum(p, axis=-1, keepdims=True), approx=True)
        ctx = jnp.dot(p.astype(jnp.bfloat16), vb[:, sl],
                      preferred_element_type=jnp.float32)          # (Sq, dk)
        acc = acc + jnp.dot(ctx.astype(jnp.bfloat16), wo[sl, :],
                            preferred_element_type=jnp.float32)    # (Sq, D)
    return acc


# ----------------------------- fused encoder block -----------------------------

def _encoder_block_kernel(x_ref, keep_ref,
                          ln1g_ref, ln1b_ref, wqkv_ref, bqkv_ref, wo_ref, bo_ref,
                          ln2g_ref, ln2b_ref, w1_ref, b1_ref, w2_ref, b2_ref,
                          o_ref, *, n_heads, eps):
    x = x_ref[...]                                     # (S, D) f32
    D = x.shape[-1]
    scale = 1.0 / math.sqrt(D // n_heads)

    # ---- self-attention sublayer: x + Wo(MHA(LN1(x))) ----
    xn = _ln(x, ln1g_ref[...], ln1b_ref[...], eps)
    qkv = (jnp.dot(xn.astype(jnp.bfloat16), wqkv_ref[...],
                   preferred_element_type=jnp.float32) + bqkv_ref[...])
    q, k, v = qkv[:, :D], qkv[:, D:2 * D], qkv[:, 2 * D:]
    mask = keep_ref[...] != 0.0                        # (1, S) key padding
    attn = _mha(q, k, v, mask, wo_ref[...], n_heads, scale)
    x = x + attn + bo_ref[...]

    # ---- FFN sublayer: x + W2(relu(W1(LN2(x)))) ----
    xn = _ln(x, ln2g_ref[...], ln2b_ref[...], eps)
    h = (jnp.dot(xn.astype(jnp.bfloat16), w1_ref[...],
                 preferred_element_type=jnp.float32) + b1_ref[...])
    h = jnp.maximum(h, 0.0)
    x = x + (jnp.dot(h.astype(jnp.bfloat16), w2_ref[...],
                     preferred_element_type=jnp.float32) + b2_ref[...])
    o_ref[...] = x


def encoder_block(p, x, src_keep, n_heads, *, eps=1e-6):
    """One fused pallas_call per encoder layer; grid over batch."""
    B, S, D = x.shape
    F = p["ff_w1"].shape[1]
    cost = pl.CostEstimate(
        flops=B * (6 * S * D * D + 4 * S * S * D + 2 * S * D * D + 4 * S * D * F),
        transcendentals=B * n_heads * S * S,
        bytes_accessed=8 * B * S * D + 2 * (4 * D * D + 2 * D * F))
    wspec = lambda shape: pl.BlockSpec(shape, lambda b: (0,) * len(shape))
    return pl.pallas_call(
        functools.partial(_encoder_block_kernel, n_heads=n_heads, eps=eps),
        out_shape=jax.ShapeDtypeStruct((B, S, D), jnp.float32),
        grid=(B,),
        in_specs=[
            pl.BlockSpec((None, S, D), lambda b: (b, 0, 0)),   # x
            pl.BlockSpec((None, 1, S), lambda b: (b, 0, 0)),   # key padding
            wspec((1, D)), wspec((1, D)),                      # ln1 g/b
            wspec((D, 3 * D)), wspec((1, 3 * D)),              # wqkv / bqkv
            wspec((D, D)), wspec((1, D)),                      # wo / bo
            wspec((1, D)), wspec((1, D)),                      # ln2 g/b
            wspec((D, F)), wspec((1, F)),                      # w1 / b1
            wspec((F, D)), wspec((1, D)),                      # w2 / b2
        ],
        out_specs=pl.BlockSpec((None, S, D), lambda b: (b, 0, 0)),
        compiler_params=pltpu.CompilerParams(dimension_semantics=("parallel",)),
        cost_estimate=cost,
    )(x, src_keep.reshape(B, 1, S),
      p["ln1_g"].reshape(1, D), p["ln1_b"].reshape(1, D),
      p["sa_wqkv"], p["sa_bqkv"].reshape(1, 3 * D),
      p["sa_wo"], p["sa_bo"].reshape(1, D),
      p["ln2_g"].reshape(1, D), p["ln2_b"].reshape(1, D),
      p["ff_w1"], p["ff_b1"].reshape(1, F),
      p["ff_w2"], p["ff_b2"].reshape(1, D))


# ----------------------------- fused decoder block -----------------------------

def _decoder_block_kernel(x_ref, enc_ref, src_keep_ref, tgt_keep_ref,
                          ln1g_ref, ln1b_ref, sa_wqkv_ref, sa_bqkv_ref,
                          sa_wo_ref, sa_bo_ref,
                          ln2g_ref, ln2b_ref, ca_wq_ref, ca_bq_ref,
                          ca_wkv_ref, ca_bkv_ref, ca_wo_ref, ca_bo_ref,
                          ln3g_ref, ln3b_ref, w1_ref, b1_ref, w2_ref, b2_ref,
                          o_ref, *, n_heads, eps):
    x = x_ref[...]                                     # (St, D) f32
    St, D = x.shape
    scale = 1.0 / math.sqrt(D // n_heads)

    # ---- masked self-attention: causal /\ target key padding, built in-kernel ----
    xn = _ln(x, ln1g_ref[...], ln1b_ref[...], eps)
    qkv = (jnp.dot(xn.astype(jnp.bfloat16), sa_wqkv_ref[...],
                   preferred_element_type=jnp.float32) + sa_bqkv_ref[...])
    q, k, v = qkv[:, :D], qkv[:, D:2 * D], qkv[:, 2 * D:]
    row = jax.lax.broadcasted_iota(jnp.int32, (St, St), 0)
    col = jax.lax.broadcasted_iota(jnp.int32, (St, St), 1)
    self_mask = jnp.logical_and(col <= row, tgt_keep_ref[...] != 0.0)
    attn = _mha(q, k, v, self_mask, sa_wo_ref[...], n_heads, scale)
    x = x + attn + sa_bo_ref[...]

    # ---- cross-attention: q from LN2(x), k/v projected from encoder output in-kernel ----
    xn = _ln(x, ln2g_ref[...], ln2b_ref[...], eps)
    q = (jnp.dot(xn.astype(jnp.bfloat16), ca_wq_ref[...],
                 preferred_element_type=jnp.float32) + ca_bq_ref[...])
    enc = enc_ref[...]                                 # (Ss, D) bf16
    kv = (jnp.dot(enc, ca_wkv_ref[...],
                  preferred_element_type=jnp.float32) + ca_bkv_ref[...])
    k, v = kv[:, :D], kv[:, D:]
    cross_mask = src_keep_ref[...] != 0.0              # (1, Ss)
    attn = _mha(q, k, v, cross_mask, ca_wo_ref[...], n_heads, scale)
    x = x + attn + ca_bo_ref[...]

    # ---- FFN sublayer ----
    xn = _ln(x, ln3g_ref[...], ln3b_ref[...], eps)
    h = (jnp.dot(xn.astype(jnp.bfloat16), w1_ref[...],
                 preferred_element_type=jnp.float32) + b1_ref[...])
    h = jnp.maximum(h, 0.0)
    x = x + (jnp.dot(h.astype(jnp.bfloat16), w2_ref[...],
                     preferred_element_type=jnp.float32) + b2_ref[...])
    o_ref[...] = x


def decoder_block(p, x, enc_out_bf16, src_keep, tgt_keep, n_heads, *, eps=1e-6):
    """One fused pallas_call per decoder layer; grid over batch."""
    B, St, D = x.shape
    Ss = enc_out_bf16.shape[1]
    F = p["ff_w1"].shape[1]
    cost = pl.CostEstimate(
        flops=B * (6 * St * D * D + 4 * St * St * D + 2 * St * D * D
                   + 2 * St * D * D + 4 * Ss * D * D + 4 * St * Ss * D
                   + 2 * St * D * D + 4 * St * D * F),
        transcendentals=B * n_heads * (St * St + St * Ss),
        bytes_accessed=8 * B * St * D + 2 * B * Ss * D
                       + 2 * (7 * D * D + 2 * D * F))
    wspec = lambda shape: pl.BlockSpec(shape, lambda b: (0,) * len(shape))
    return pl.pallas_call(
        functools.partial(_decoder_block_kernel, n_heads=n_heads, eps=eps),
        out_shape=jax.ShapeDtypeStruct((B, St, D), jnp.float32),
        grid=(B,),
        in_specs=[
            pl.BlockSpec((None, St, D), lambda b: (b, 0, 0)),  # x
            pl.BlockSpec((None, Ss, D), lambda b: (b, 0, 0)),  # encoder output (bf16)
            pl.BlockSpec((None, 1, Ss), lambda b: (b, 0, 0)),  # src key padding
            pl.BlockSpec((None, 1, St), lambda b: (b, 0, 0)),  # tgt key padding
            wspec((1, D)), wspec((1, D)),                      # ln1
            wspec((D, 3 * D)), wspec((1, 3 * D)),              # sa wqkv/bqkv
            wspec((D, D)), wspec((1, D)),                      # sa wo/bo
            wspec((1, D)), wspec((1, D)),                      # ln2
            wspec((D, D)), wspec((1, D)),                      # ca wq/bq
            wspec((D, 2 * D)), wspec((1, 2 * D)),              # ca wkv/bkv
            wspec((D, D)), wspec((1, D)),                      # ca wo/bo
            wspec((1, D)), wspec((1, D)),                      # ln3
            wspec((D, F)), wspec((1, F)),                      # w1/b1
            wspec((F, D)), wspec((1, D)),                      # w2/b2
        ],
        out_specs=pl.BlockSpec((None, St, D), lambda b: (b, 0, 0)),
        compiler_params=pltpu.CompilerParams(dimension_semantics=("parallel",)),
        cost_estimate=cost,
    )(x, enc_out_bf16, src_keep.reshape(B, 1, Ss), tgt_keep.reshape(B, 1, St),
      p["ln1_g"].reshape(1, D), p["ln1_b"].reshape(1, D),
      p["sa_wqkv"], p["sa_bqkv"].reshape(1, 3 * D),
      p["sa_wo"], p["sa_bo"].reshape(1, D),
      p["ln2_g"].reshape(1, D), p["ln2_b"].reshape(1, D),
      p["ca_wq"], p["ca_bq"].reshape(1, D),
      p["ca_wkv"], p["ca_bkv"].reshape(1, 2 * D),
      p["ca_wo"], p["ca_bo"].reshape(1, D),
      p["ln3_g"].reshape(1, D), p["ln3_b"].reshape(1, D),
      p["ff_w1"], p["ff_b1"].reshape(1, F),
      p["ff_w2"], p["ff_b2"].reshape(1, D))


# ----------------------------- token-wise kernels -----------------------------

def _layernorm_kernel(x_ref, g_ref, b_ref, o_ref, *, eps):
    o_ref[...] = _ln(x_ref[...], g_ref[...], b_ref[...], eps).astype(o_ref.dtype)


def layer_norm_bf16(x, gamma, beta, *, eps=1e-6, tm=512):
    """Final encoder LayerNorm; emits bf16 (only consumed by MXU matmuls downstream)."""
    B, S, D = x.shape
    M = B * S
    TM = _tile_rows(M, tm, multiple=16)     # bf16 output -> sublane multiple of 16
    out = pl.pallas_call(
        functools.partial(_layernorm_kernel, eps=eps),
        out_shape=jax.ShapeDtypeStruct((M, D), jnp.bfloat16),
        grid=(M // TM,),
        in_specs=[pl.BlockSpec((TM, D), lambda i: (i, 0)),
                  pl.BlockSpec((1, D), lambda i: (0, 0)),
                  pl.BlockSpec((1, D), lambda i: (0, 0))],
        out_specs=pl.BlockSpec((TM, D), lambda i: (i, 0)),
        compiler_params=pltpu.CompilerParams(dimension_semantics=("parallel",)),
    )(x.reshape(M, D), gamma.reshape(1, D), beta.reshape(1, D))
    return out.reshape(B, S, D)


def _ln_linear_kernel(x_ref, g_ref, b_ref, w_ref, bias_ref, o_ref, *, eps):
    xn = _ln(x_ref[...], g_ref[...], b_ref[...], eps)
    o_ref[...] = (jnp.dot(xn.astype(jnp.bfloat16), w_ref[...],
                          preferred_element_type=jnp.float32) + bias_ref[...])


def ln_linear(x2d, gamma, beta, w_bf16, b, *, eps=1e-6, tm=256, tn=512):
    """Fused LayerNorm(x) @ w + b (final decoder norm + vocab projection)."""
    M, D = x2d.shape
    N = w_bf16.shape[1]
    TM = _tile_rows(M, tm)
    TN = _tile_lanes(N, tn)
    cost = pl.CostEstimate(flops=2 * M * D * N + 8 * M * D, transcendentals=M,
                           bytes_accessed=4 * M * D + 2 * D * N + 4 * M * N)
    return pl.pallas_call(
        functools.partial(_ln_linear_kernel, eps=eps),
        out_shape=jax.ShapeDtypeStruct((M, N), jnp.float32),
        grid=(M // TM, N // TN),
        in_specs=[pl.BlockSpec((TM, D), lambda i, j: (i, 0)),
                  pl.BlockSpec((1, D), lambda i, j: (0, 0)),
                  pl.BlockSpec((1, D), lambda i, j: (0, 0)),
                  pl.BlockSpec((D, TN), lambda i, j: (0, j)),
                  pl.BlockSpec((1, TN), lambda i, j: (0, j))],
        out_specs=pl.BlockSpec((TM, TN), lambda i, j: (i, j)),
        compiler_params=pltpu.CompilerParams(
            dimension_semantics=("parallel", "parallel")),
        cost_estimate=cost,
    )(x2d, gamma.reshape(1, D), beta.reshape(1, D), w_bf16, b.reshape(1, N))


# ----------------------------- model glue -----------------------------

def sinusoidal_pe(max_len, d_model):
    pos = jnp.arange(max_len, dtype=jnp.float32)[:, None]
    div = jnp.exp(jnp.arange(0, d_model, 2, dtype=jnp.float32)
                  * (-math.log(10000.0) / d_model))
    pe = jnp.zeros((max_len, d_model), jnp.float32)
    pe = pe.at[:, 0::2].set(jnp.sin(pos * div))
    pe = pe.at[:, 1::2].set(jnp.cos(pos * div))
    return pe


def transformer_forward(params, cfg, input_ids, output_ids, input_mask, output_mask):
    D, H = cfg["d_model"], cfg["n_heads"]
    B, Ss = input_ids.shape
    St = output_ids.shape[1]

    # Key-padding vectors only (masks are rebuilt in-kernel; no (B, Sq, Sk) HBM masks).
    # TODO(synk): assumes encoder mask is key padding and decoder mask is causal /\ key
    # padding (standard Transformer convention); arbitrary dense masks are not supported.
    src_keep = input_mask[:, 0, 0, :].astype(jnp.float32)     # (B, Ss)
    tgt_keep = output_mask[:, 0, -1, :].astype(jnp.float32)   # (B, St)

    # ---- encode ----
    x = params["src_emb"][input_ids] * math.sqrt(D)           # Embeddings * sqrt(d_model)
    x = x + params["pe"][:Ss][None, :, :]                     # PositionalEncoding (dropout=id)
    for lp in params["enc_layers"]:
        x = encoder_block(lp, x, src_keep, H)
    enc_out = layer_norm_bf16(x, params["enc_norm_g"], params["enc_norm_b"])

    # ---- decode ----
    y = params["tgt_emb"][output_ids] * math.sqrt(D)
    y = y + params["pe"][:St][None, :, :]
    for lp in params["dec_layers"]:
        y = decoder_block(lp, y, enc_out, src_keep, tgt_keep, H)

    # ---- final decoder norm fused with projection to token logits ----
    # TODO(synk): reference ProjectionLayer body not provided; some variants apply
    # log_softmax — emitting raw logits here.
    logits = ln_linear(y.reshape(B * St, D), params["dec_norm_g"], params["dec_norm_b"],
                       params["proj_w"], params["proj_b"])
    return logits.reshape(B, St, -1)


# ----------------------------- param init -----------------------------

def init_params(key, cfg):
    D, F, H = cfg["d_model"], cfg["d_ff"], cfg["n_heads"]
    Vs, Vt, L = cfg["src_vocab"], cfg["tgt_vocab"], cfg["n_layers"]

    keys = iter(jax.random.split(key, 512))

    def w(shape, scale=0.02, dtype=jnp.bfloat16):
        # MXU weights stored in bf16 (f32 accumulation in-kernel); rest in f32.
        return (jax.random.normal(next(keys), shape, jnp.float32) * scale).astype(dtype)

    def self_attn_params():
        return {"sa_wqkv": w((D, 3 * D)), "sa_bqkv": jnp.zeros((3 * D,), jnp.float32),
                "sa_wo": w((D, D)), "sa_bo": jnp.zeros((D,), jnp.float32)}

    def cross_attn_params():
        return {"ca_wq": w((D, D)), "ca_bq": jnp.zeros((D,), jnp.float32),
                "ca_wkv": w((D, 2 * D)), "ca_bkv": jnp.zeros((2 * D,), jnp.float32),
                "ca_wo": w((D, D)), "ca_bo": jnp.zeros((D,), jnp.float32)}

    def ffn_params():
        return {"ff_w1": w((D, F)), "ff_b1": jnp.zeros((F,), jnp.float32),
                "ff_w2": w((F, D)), "ff_b2": jnp.zeros((D,), jnp.float32)}

    def enc_layer():
        p = {}
        p.update(self_attn_params())
        p.update(ffn_params())
        p.update({"ln1_g": jnp.ones((D,), jnp.float32), "ln1_b": jnp.zeros((D,), jnp.float32),
                  "ln2_g": jnp.ones((D,), jnp.float32), "ln2_b": jnp.zeros((D,), jnp.float32)})
        return p

    def dec_layer():
        p = {}
        p.update(self_attn_params())
        p.update(cross_attn_params())
        p.update(ffn_params())
        p.update({"ln1_g": jnp.ones((D,), jnp.float32), "ln1_b": jnp.zeros((D,), jnp.float32),
                  "ln2_g": jnp.ones((D,), jnp.float32), "ln2_b": jnp.zeros((D,), jnp.float32),
                  "ln3_g": jnp.ones((D,), jnp.float32), "ln3_b": jnp.zeros((D,), jnp.float32)})
        return p

    return {
        "src_emb": w((Vs, D), 1.0 / math.sqrt(D), dtype=jnp.float32),
        "tgt_emb": w((Vt, D), 1.0 / math.sqrt(D), dtype=jnp.float32),
        "pe": sinusoidal_pe(cfg["max_len"], D),
        "enc_layers": [enc_layer() for _ in range(L)],
        "dec_layers": [dec_layer() for _ in range(L)],
        "enc_norm_g": jnp.ones((D,), jnp.float32), "enc_norm_b": jnp.zeros((D,), jnp.float32),
        "dec_norm_g": jnp.ones((D,), jnp.float32), "dec_norm_b": jnp.zeros((D,), jnp.float32),
        "proj_w": w((D, Vt)), "proj_b": jnp.zeros((Vt,), jnp.float32),
    }


# ----------------------------- main -----------------------------

if __name__ == "__main__":
    # Lane-dense toy config: d_model / d_ff / vocab are multiples of 128.
    cfg = {"d_model": 128, "d_ff": 256, "n_heads": 4, "n_layers": 2,
           "src_vocab": 128, "tgt_vocab": 128, "max_len": 64}

    B, Ss, St = 2, 8, 8
    key = jax.random.PRNGKey(0)
    k_param, k_src, k_tgt = jax.random.split(key, 3)

    params = init_params(k_param, cfg)

    input_ids = jax.random.randint(k_src, (B, Ss), 0, cfg["src_vocab"], dtype=jnp.int32)
    output_ids = jax.random.randint(k_tgt, (B, St), 0, cfg["tgt_vocab"], dtype=jnp.int32)

    # encoder (padding) mask: (B, 1, 1, Ss); decoder mask: (B, 1, St, St) causal
    input_mask = jnp.ones((B, 1, 1, Ss), jnp.float32)
    causal = jnp.tril(jnp.ones((St, St), jnp.float32))
    output_mask = jnp.broadcast_to(causal[None, None, :, :], (B, 1, St, St))

    logits = transformer_forward(params, cfg, input_ids, output_ids, input_mask, output_mask)
    jax.block_until_ready(logits)

    assert logits.shape == (B, St, cfg["tgt_vocab"]), logits.shape
    assert bool(jnp.all(jnp.isfinite(logits)))
    print("KERNEL_OK")
</pallas_src>

<mosaic_0001>
module attributes {stable_mosaic.version = 11 : i64} {
  func.func @_encoder_block_kernel(%arg0: i32, %arg1: memref<1x8x128xf32, #tpu.memory_space<vmem>>, %arg2: memref<1x1x8xf32, #tpu.memory_space<vmem>>, %arg3: memref<1x128xf32, #tpu.memory_space<vmem>>, %arg4: memref<1x128xf32, #tpu.memory_space<vmem>>, %arg5: memref<128x384xbf16, #tpu.memory_space<vmem>>, %arg6: memref<1x384xf32, #tpu.memory_space<vmem>>, %arg7: memref<128x128xbf16, #tpu.memory_space<vmem>>, %arg8: memref<1x128xf32, #tpu.memory_space<vmem>>, %arg9: memref<1x128xf32, #tpu.memory_space<vmem>>, %arg10: memref<1x128xf32, #tpu.memory_space<vmem>>, %arg11: memref<128x256xbf16, #tpu.memory_space<vmem>>, %arg12: memref<1x256xf32, #tpu.memory_space<vmem>>, %arg13: memref<256x128xbf16, #tpu.memory_space<vmem>>, %arg14: memref<1x128xf32, #tpu.memory_space<vmem>>, %arg15: memref<1x8x128xf32, #tpu.memory_space<vmem>>) attributes {dimension_semantics = [#tpu.dimension_semantics<parallel>], iteration_bounds = array<i64: 2>, scalar_prefetch = 0 : i64, scratch_operands = 0 : i64, tpu.core_type = #tpu.core_type<tc>, window_params = [{transform_indices = @transform_0, window_bounds = array<i64: 1, 8, 128>}, {transform_indices = @transform_1, window_bounds = array<i64: 1, 1, 8>}, {pipeline_mode = #tpu.pipeline_mode<synchronous>, transform_indices = @transform_2, window_bounds = array<i64: 1, 128>}, {pipeline_mode = #tpu.pipeline_mode<synchronous>, transform_indices = @transform_3, window_bounds = array<i64: 1, 128>}, {pipeline_mode = #tpu.pipeline_mode<synchronous>, transform_indices = @transform_4, window_bounds = array<i64: 128, 384>}, {pipeline_mode = #tpu.pipeline_mode<synchronous>, transform_indices = @transform_5, window_bounds = array<i64: 1, 384>}, {pipeline_mode = #tpu.pipeline_mode<synchronous>, transform_indices = @transform_6, window_bounds = array<i64: 128, 128>}, {pipeline_mode = #tpu.pipeline_mode<synchronous>, transform_indices = @transform_7, window_bounds = array<i64: 1, 128>}, {pipeline_mode = #tpu.pipeline_mode<synchronous>, transform_indices = @transform_8, window_bounds = array<i64: 1, 128>}, {pipeline_mode = #tpu.pipeline_mode<synchronous>, transform_indices = @transform_9, window_bounds = array<i64: 1, 128>}, {pipeline_mode = #tpu.pipeline_mode<synchronous>, transform_indices = @transform_10, window_bounds = array<i64: 128, 256>}, {pipeline_mode = #tpu.pipeline_mode<synchronous>, transform_indices = @transform_11, window_bounds = array<i64: 1, 256>}, {pipeline_mode = #tpu.pipeline_mode<synchronous>, transform_indices = @transform_12, window_bounds = array<i64: 256, 128>}, {pipeline_mode = #tpu.pipeline_mode<synchronous>, transform_indices = @transform_13, window_bounds = array<i64: 1, 128>}, {transform_indices = @transform_14, window_bounds = array<i64: 1, 8, 128>}]} {
    %c0 = arith.constant 0 : index
    %c0_0 = arith.constant 0 : index
    %c0_1 = arith.constant 0 : index
    %0 = vector.load %arg1[%c0, %c0_0, %c0_1] : memref<1x8x128xf32, #tpu.memory_space<vmem>>, vector<1x8x128xf32>
    %1 = vector.shape_cast %0 : vector<1x8x128xf32> to vector<8x128xf32>
    %c0_2 = arith.constant 0 : index
    %c0_3 = arith.constant 0 : index
    %2 = vector.load %arg3[%c0_2, %c0_3] : memref<1x128xf32, #tpu.memory_space<vmem>>, vector<1x128xf32>
    %c0_4 = arith.constant 0 : index
    %c0_5 = arith.constant 0 : index
    %3 = vector.load %arg4[%c0_4, %c0_5] : memref<1x128xf32, #tpu.memory_space<vmem>>, vector<1x128xf32>
    %cst = arith.constant dense<0.000000e+00> : vector<8xf32>
    %4 = vector.multi_reduction <add>, %1, %cst [1] : vector<8x128xf32> to vector<8xf32>
    %5 = vector.shape_cast %4 : vector<8xf32> to vector<8x1xf32>
    %cst_6 = arith.constant 1.280000e+02 : f32
    %6 = vector.broadcast %cst_6 : f32 to vector<8x1xf32>
    %7 = arith.divf %5, %6 : vector<8x1xf32>
    %8 = vector.broadcast %7 : vector<8x1xf32> to vector<8x128xf32>
    %9 = arith.subf %1, %8 : vector<8x128xf32>
    %10 = arith.mulf %9, %9 : vector<8x128xf32>
    %cst_7 = arith.constant dense<0.000000e+00> : vector<8xf32>
    %11 = vector.multi_reduction <add>, %10, %cst_7 [1] : vector<8x128xf32> to vector<8xf32>
    %12 = vector.shape_cast %11 : vector<8xf32> to vector<8x1xf32>
    %cst_8 = arith.constant 1.280000e+02 : f32
    %13 = vector.broadcast %cst_8 : f32 to vector<8x1xf32>
    %14 = arith.divf %12, %13 : vector<8x1xf32>
    %15 = vector.broadcast %7 : vector<8x1xf32> to vector<8x128xf32>
    %16 = arith.subf %1, %15 : vector<8x128xf32>
    %cst_9 = arith.constant 9.99999997E-7 : f32
    %17 = vector.broadcast %cst_9 : f32 to vector<8x1xf32>
    %18 = arith.addf %14, %17 : vector<8x1xf32>
    %19 = math.rsqrt %18 : vector<8x1xf32>
    %20 = vector.broadcast %19 : vector<8x1xf32> to vector<8x128xf32>
    %21 = arith.mulf %16, %20 : vector<8x128xf32>
    %22 = vector.broadcast %2 : vector<1x128xf32> to vector<8x128xf32>
    %23 = arith.mulf %21, %22 : vector<8x128xf32>
    %24 = vector.broadcast %3 : vector<1x128xf32> to vector<8x128xf32>
    %25 = arith.addf %23, %24 : vector<8x128xf32>
    %26 = arith.truncf %25 : vector<8x128xf32> to vector<8x128xbf16>
    %c0_10 = arith.constant 0 : index
    %c0_11 = arith.constant 0 : index
    %27 = vector.load %arg5[%c0_10, %c0_11] : memref<128x384xbf16, #tpu.memory_space<vmem>>, vector<128x384xbf16>
    %cst_12 = arith.constant dense<0.000000e+00> : vector<8x384xf32>
    %28 = tpu.matmul %26, %27, %cst_12 {dimension_numbers = #tpu.dot_dimension_numbers<[1], [0], [0], [1], [0, 0, 1, 1], [], []>} : vector<8x128xbf16>, vector<128x384xbf16>, vector<8x384xf32> -> vector<8x384xf32>
    %c0_13 = arith.constant 0 : index
    %c0_14 = arith.constant 0 : index
    %29 = vector.load %arg6[%c0_13, %c0_14] : memref<1x384xf32, #tpu.memory_space<vmem>>, vector<1x384xf32>
    %30 = vector.broadcast %29 : vector<1x384xf32> to vector<8x384xf32>
    %31 = arith.addf %28, %30 : vector<8x384xf32>
    %32 = vector.extract_strided_slice %31 {offsets = [0, 0], sizes = [8, 128], strides = [1, 1]} : vector<8x384xf32> to vector<8x128xf32>
    %33 = vector.extract_strided_slice %31 {offsets = [0, 128], sizes = [8, 128], strides = [1, 1]} : vector<8x384xf32> to vector<8x128xf32>
    %34 = vector.extract_strided_slice %31 {offsets = [0, 256], sizes = [8, 128], strides = [1, 1]} : vector<8x384xf32> to vector<8x128xf32>
    %c0_15 = arith.constant 0 : index
    %c0_16 = arith.constant 0 : index
    %c0_17 = arith.constant 0 : index
    %35 = vector.load %arg2[%c0_15, %c0_16, %c0_17] : memref<1x1x8xf32, #tpu.memory_space<vmem>>, vector<1x1x8xf32>
    %36 = vector.shape_cast %35 : vector<1x1x8xf32> to vector<1x8xf32>
    %cst_18 = arith.constant 0.000000e+00 : f32
    %37 = vector.broadcast %cst_18 : f32 to vector<1x8xf32>
    %38 = arith.cmpf one, %36, %37 : vector<1x8xf32>
    %c0_19 = arith.constant 0 : index
    %c0_20 = arith.constant 0 : index
    %39 = vector.load %arg7[%c0_19, %c0_20] : memref<128x128xbf16, #tpu.memory_space<vmem>>, vector<128x128xbf16>
    %40 = arith.truncf %32 : vector<8x128xf32> to vector<8x128xbf16>
    %41 = arith.truncf %33 : vector<8x128xf32> to vector<8x128xbf16>
    %42 = arith.truncf %34 : vector<8x128xf32> to vector<8x128xbf16>
    %cst_21 = arith.constant 0.000000e+00 : f32
    %43 = vector.broadcast %cst_21 : f32 to vector<8x128xf32>
    %44 = vector.extract_strided_slice %40 {offsets = [0, 0], sizes = [8, 32], strides = [1, 1]} : vector<8x128xbf16> to vector<8x32xbf16>
    %45 = vector.extract_strided_slice %41 {offsets = [0, 0], sizes = [8, 32], strides = [1, 1]} : vector<8x128xbf16> to vector<8x32xbf16>
    %cst_22 = arith.constant dense<0.000000e+00> : vector<8x8xf32>
    %46 = tpu.matmul %44, %45, %cst_22 {dimension_numbers = #tpu.dot_dimension_numbers<[1], [1], [0], [0], [0, 0, 1, 0], [], []>} : vector<8x32xbf16>, vector<8x32xbf16>, vector<8x8xf32> -> vector<8x8xf32>
    %cst_23 = arith.constant 0.176776692 : f32
    %47 = vector.broadcast %cst_23 : f32 to vector<8x8xf32>
    %48 = arith.mulf %46, %47 : vector<8x8xf32>
    %cst_24 = arith.constant -1.000000e+09 : f32
    %49 = vector.shape_cast %38 : vector<1x8xi1> to vector<1x8xi1>
    %50 = vector.broadcast %49 : vector<1x8xi1> to vector<8x8xi1>
    %51 = vector.broadcast %cst_24 : f32 to vector<8x8xf32>
    %52 = arith.select %50, %48, %51 : vector<8x8xi1>, vector<8x8xf32>
    %cst_25 = arith.constant dense<0xFF800000> : vector<8xf32>
    %53 = vector.multi_reduction <maximumf>, %52, %cst_25 [1] : vector<8x8xf32> to vector<8xf32>
    %54 = vector.shape_cast %53 : vector<8xf32> to vector<8x1xf32>
    %55 = vector.broadcast %54 : vector<8x1xf32> to vector<8x8xf32>
    %56 = arith.subf %52, %55 : vector<8x8xf32>
    %57 = math.exp %56 : vector<8x8xf32>
    %cst_26 = arith.constant dense<0.000000e+00> : vector<8xf32>
    %58 = vector.multi_reduction <add>, %57, %cst_26 [1] : vector<8x8xf32> to vector<8xf32>
    %59 = vector.shape_cast %58 : vector<8xf32> to vector<8x1xf32>
    %60 = tpu.reciprocal %59 {approx = true} : vector<8x1xf32> -> vector<8x1xf32>
    %61 = vector.broadcast %60 : vector<8x1xf32> to vector<8x8xf32>
    %62 = arith.mulf %57, %61 : vector<8x8xf32>
    %63 = arith.truncf %62 : vector<8x8xf32> to vector<8x8xbf16>
    %64 = vector.extract_strided_slice %42 {offsets = [0, 0], sizes = [8, 32], strides = [1, 1]} : vector<8x128xbf16> to vector<8x32xbf16>
    %cst_27 = arith.constant dense<0.000000e+00> : vector<8x32xf32>
    %65 = tpu.matmul %63, %64, %cst_27 {dimension_numbers = #tpu.dot_dimension_numbers<[1], [0], [0], [1], [0, 0, 1, 1], [], []>} : vector<8x8xbf16>, vector<8x32xbf16>, vector<8x32xf32> -> vector<8x32xf32>
    %66 = arith.truncf %65 : vector<8x32xf32> to vector<8x32xbf16>
    %67 = vector.extract_strided_slice %39 {offsets = [0, 0], sizes = [32, 128], strides = [1, 1]} : vector<128x128xbf16> to vector<32x128xbf16>
    %cst_28 = arith.constant dense<0.000000e+00> : vector<8x128xf32>
    %68 = tpu.matmul %66, %67, %cst_28 {dimension_numbers = #tpu.dot_dimension_numbers<[1], [0], [0], [1], [0, 0, 1, 1], [], []>} : vector<8x32xbf16>, vector<32x128xbf16>, vector<8x128xf32> -> vector<8x128xf32>
    %69 = arith.addf %43, %68 : vector<8x128xf32>
    %70 = vector.extract_strided_slice %40 {offsets = [0, 32], sizes = [8, 32], strides = [1, 1]} : vector<8x128xbf16> to vector<8x32xbf16>
    %71 = vector.extract_strided_slice %41 {offsets = [0, 32], sizes = [8, 32], strides = [1, 1]} : vector<8x128xbf16> to vector<8x32xbf16>
    %cst_29 = arith.constant dense<0.000000e+00> : vector<8x8xf32>
    %72 = tpu.matmul %70, %71, %cst_29 {dimension_numbers = #tpu.dot_dimension_numbers<[1], [1], [0], [0], [0, 0, 1, 0], [], []>} : vector<8x32xbf16>, vector<8x32xbf16>, vector<8x8xf32> -> vector<8x8xf32>
    %cst_30 = arith.constant 0.176776692 : f32
    %73 = vector.broadcast %cst_30 : f32 to vector<8x8xf32>
    %74 = arith.mulf %72, %73 : vector<8x8xf32>
    %cst_31 = arith.constant -1.000000e+09 : f32
    %75 = vector.shape_cast %38 : vector<1x8xi1> to vector<1x8xi1>
    %76 = vector.broadcast %75 : vector<1x8xi1> to vector<8x8xi1>
    %77 = vector.broadcast %cst_31 : f32 to vector<8x8xf32>
    %78 = arith.select %76, %74, %77 : vector<8x8xi1>, vector<8x8xf32>
    %cst_32 = arith.constant dense<0xFF800000> : vector<8xf32>
    %79 = vector.multi_reduction <maximumf>, %78, %cst_32 [1] : vector<8x8xf32> to vector<8xf32>
    %80 = vector.shape_cast %79 : vector<8xf32> to vector<8x1xf32>
    %81 = vector.broadcast %80 : vector<8x1xf32> to vector<8x8xf32>
    %82 = arith.subf %78, %81 : vector<8x8xf32>
    %83 = math.exp %82 : vector<8x8xf32>
    %cst_33 = arith.constant dense<0.000000e+00> : vector<8xf32>
    %84 = vector.multi_reduction <add>, %83, %cst_33 [1] : vector<8x8xf32> to vector<8xf32>
    %85 = vector.shape_cast %84 : vector<8xf32> to vector<8x1xf32>
    %86 = tpu.reciprocal %85 {approx = true} : vector<8x1xf32> -> vector<8x1xf32>
    %87 = vector.broadcast %86 : vector<8x1xf32> to vector<8x8xf32>
    %88 = arith.mulf %83, %87 : vector<8x8xf32>
    %89 = arith.truncf %88 : vector<8x8xf32> to vector<8x8xbf16>
    %90 = vector.extract_strided_slice %42 {offsets = [0, 32], sizes = [8, 32], strides = [1, 1]} : vector<8x128xbf16> to vector<8x32xbf16>
    %cst_34 = arith.constant dense<0.000000e+00> : vector<8x32xf32>
    %91 = tpu.matmul %89, %90, %cst_34 {dimension_numbers = #tpu.dot_dimension_numbers<[1], [0], [0], [1], [0, 0, 1, 1], [], []>} : vector<8x8xbf16>, vector<8x32xbf16>, vector<8x32xf32> -> vector<8x32xf32>
    %92 = arith.truncf %91 : vector<8x32xf32> to vector<8x32xbf16>
    %93 = vector.extract_strided_slice %39 {offsets = [32, 0], sizes = [32, 128], strides = [1, 1]} : vector<128x128xbf16> to vector<32x128xbf16>
    %cst_35 = arith.constant dense<0.000000e+00> : vector<8x128xf32>
    %94 = tpu.matmul %92, %93, %cst_35 {dimension_numbers = #tpu.dot_dimension_numbers<[1], [0], [0], [1], [0, 0, 1, 1], [], []>} : vector<8x32xbf16>, vector<32x128xbf16>, vector<8x128xf32> -> vector<8x128xf32>
    %95 = arith.addf %69, %94 : vector<8x128xf32>
    %96 = vector.extract_strided_slice %40 {offsets = [0, 64], sizes = [8, 32], strides = [1, 1]} : vector<8x128xbf16> to vector<8x32xbf16>
    %97 = vector.extract_strided_slice %41 {offsets = [0, 64], sizes = [8, 32], strides = [1, 1]} : vector<8x128xbf16> to vector<8x32xbf16>
    %cst_36 = arith.constant dense<0.000000e+00> : vector<8x8xf32>
    %98 = tpu.matmul %96, %97, %cst_36 {dimension_numbers = #tpu.dot_dimension_numbers<[1], [1], [0], [0], [0, 0, 1, 0], [], []>} : vector<8x32xbf16>, vector<8x32xbf16>, vector<8x8xf32> -> vector<8x8xf32>
    %cst_37 = arith.constant 0.176776692 : f32
    %99 = vector.broadcast %cst_37 : f32 to vector<8x8xf32>
    %100 = arith.mulf %98, %99 : vector<8x8xf32>
    %cst_38 = arith.constant -1.000000e+09 : f32
    %101 = vector.shape_cast %38 : vector<1x8xi1> to vector<1x8xi1>
    %102 = vector.broadcast %101 : vector<1x8xi1> to vector<8x8xi1>
    %103 = vector.broadcast %cst_38 : f32 to vector<8x8xf32>
    %104 = arith.select %102, %100, %103 : vector<8x8xi1>, vector<8x8xf32>
    %cst_39 = arith.constant dense<0xFF800000> : vector<8xf32>
    %105 = vector.multi_reduction <maximumf>, %104, %cst_39 [1] : vector<8x8xf32> to vector<8xf32>
    %106 = vector.shape_cast %105 : vector<8xf32> to vector<8x1xf32>
    %107 = vector.broadcast %106 : vector<8x1xf32> to vector<8x8xf32>
    %108 = arith.subf %104, %107 : vector<8x8xf32>
    %109 = math.exp %108 : vector<8x8xf32>
    %cst_40 = arith.constant dense<0.000000e+00> : vector<8xf32>
    %110 = vector.multi_reduction <add>, %109, %cst_40 [1] : vector<8x8xf32> to vector<8xf32>
    %111 = vector.shape_cast %110 : vector<8xf32> to vector<8x1xf32>
    %112 = tpu.reciprocal %111 {approx = true} : vector<8x1xf32> -> vector<8x1xf32>
    %113 = vector.broadcast %112 : vector<8x1xf32> to vector<8x8xf32>
    %114 = arith.mulf %109, %113 : vector<8x8xf32>
    %115 = arith.truncf %114 : vector<8x8xf32> to vector<8x8xbf16>
    %116 = vector.extract_strided_slice %42 {offsets = [0, 64], sizes = [8, 32], strides = [1, 1]} : vector<8x128xbf16> to vector<8x32xbf16>
    %cst_41 = arith.constant dense<0.000000e+00> : vector<8x32xf32>
    %117 = tpu.matmul %115, %116, %cst_41 {dimension_numbers = #tpu.dot_dimension_numbers<[1], [0], [0], [1], [0, 0, 1, 1], [], []>} : vector<8x8xbf16>, vector<8x32xbf16>, vector<8x32xf32> -> vector<8x32xf32>
    %118 = arith.truncf %117 : vector<8x32xf32> to vector<8x32xbf16>
    %119 = vector.extract_strided_slice %39 {offsets = [64, 0], sizes = [32, 128], strides = [1, 1]} : vector<128x128xbf16> to vector<32x128xbf16>
    %cst_42 = arith.constant dense<0.000000e+00> : vector<8x128xf32>
    %120 = tpu.matmul %118, %119, %cst_42 {dimension_numbers = #tpu.dot_dimension_numbers<[1], [0], [0], [1], [0, 0, 1, 1], [], []>} : vector<8x32xbf16>, vector<32x128xbf16>, vector<8x128xf32> -> vector<8x128xf32>
    %121 = arith.addf %95, %120 : vector<8x128xf32>
    %122 = vector.extract_strided_slice %40 {offsets = [0, 96], sizes = [8, 32], strides = [1, 1]} : vector<8x128xbf16> to vector<8x32xbf16>
    %123 = vector.extract_strided_slice %41 {offsets = [0, 96], sizes = [8, 32], strides = [1, 1]} : vector<8x128xbf16> to vector<8x32xbf16>
    %cst_43 = arith.constant dense<0.000000e+00> : vector<8x8xf32>
    %124 = tpu.matmul %122, %123, %cst_43 {dimension_numbers = #tpu.dot_dimension_numbers<[1], [1], [0], [0], [0, 0, 1, 0], [], []>} : vector<8x32xbf16>, vector<8x32xbf16>, vector<8x8xf32> -> vector<8x8xf32>
    %cst_44 = arith.constant 0.176776692 : f32
    %125 = vector.broadcast %cst_44 : f32 to vector<8x8xf32>
    %126 = arith.mulf %124, %125 : vector<8x8xf32>
    %cst_45 = arith.constant -1.000000e+09 : f32
    %127 = vector.shape_cast %38 : vector<1x8xi1> to vector<1x8xi1>
    %128 = vector.broadcast %127 : vector<1x8xi1> to vector<8x8xi1>
    %129 = vector.broadcast %cst_45 : f32 to vector<8x8xf32>
    %130 = arith.select %128, %126, %129 : vector<8x8xi1>, vector<8x8xf32>
    %cst_46 = arith.constant dense<0xFF800000> : vector<8xf32>
    %131 = vector.multi_reduction <maximumf>, %130, %cst_46 [1] : vector<8x8xf32> to vector<8xf32>
    %132 = vector.shape_cast %131 : vector<8xf32> to vector<8x1xf32>
    %133 = vector.broadcast %132 : vector<8x1xf32> to vector<8x8xf32>
    %134 = arith.subf %130, %133 : vector<8x8xf32>
    %135 = math.exp %134 : vector<8x8xf32>
    %cst_47 = arith.constant dense<0.000000e+00> : vector<8xf32>
    %136 = vector.multi_reduction <add>, %135, %cst_47 [1] : vector<8x8xf32> to vector<8xf32>
    %137 = vector.shape_cast %136 : vector<8xf32> to vector<8x1xf32>
    %138 = tpu.reciprocal %137 {approx = true} : vector<8x1xf32> -> vector<8x1xf32>
    %139 = vector.broadcast %138 : vector<8x1xf32> to vector<8x8xf32>
    %140 = arith.mulf %135, %139 : vector<8x8xf32>
    %141 = arith.truncf %140 : vector<8x8xf32> to vector<8x8xbf16>
    %142 = vector.extract_strided_slice %42 {offsets = [0, 96], sizes = [8, 32], strides = [1, 1]} : vector<8x128xbf16> to vector<8x32xbf16>
    %cst_48 = arith.constant dense<0.000000e+00> : vector<8x32xf32>
    %143 = tpu.matmul %141, %142, %cst_48 {dimension_numbers = #tpu.dot_dimension_numbers<[1], [0], [0], [1], [0, 0, 1, 1], [], []>} : vector<8x8xbf16>, vector<8x32xbf16>, vector<8x32xf32> -> vector<8x32xf32>
    %144 = arith.truncf %143 : vector<8x32xf32> to vector<8x32xbf16>
    %145 = vector.extract_strided_slice %39 {offsets = [96, 0], sizes = [32, 128], strides = [1, 1]} : vector<128x128xbf16> to vector<32x128xbf16>
    %cst_49 = arith.constant dense<0.000000e+00> : vector<8x128xf32>
    %146 = tpu.matmul %144, %145, %cst_49 {dimension_numbers = #tpu.dot_dimension_numbers<[1], [0], [0], [1], [0, 0, 1, 1], [], []>} : vector<8x32xbf16>, vector<32x128xbf16>, vector<8x128xf32> -> vector<8x128xf32>
    %147 = arith.addf %121, %146 : vector<8x128xf32>
    %148 = arith.addf %1, %147 : vector<8x128xf32>
    %c0_50 = arith.constant 0 : index
    %c0_51 = arith.constant 0 : index
    %149 = vector.load %arg8[%c0_50, %c0_51] : memref<1x128xf32, #tpu.memory_space<vmem>>, vector<1x128xf32>
    %150 = vector.broadcast %149 : vector<1x128xf32> to vector<8x128xf32>
    %151 = arith.addf %148, %150 : vector<8x128xf32>
    %c0_52 = arith.constant 0 : index
    %c0_53 = arith.constant 0 : index
    %152 = vector.load %arg9[%c0_52, %c0_53] : memref<1x128xf32, #tpu.memory_space<vmem>>, vector<1x128xf32>
    %c0_54 = arith.constant 0 : index
    %c0_55 = arith.constant 0 : index
    %153 = vector.load %arg10[%c0_54, %c0_55] : memref<1x128xf32, #tpu.memory_space<vmem>>, vector<1x128xf32>
    %cst_56 = arith.constant dense<0.000000e+00> : vector<8xf32>
    %154 = vector.multi_reduction <add>, %151, %cst_56 [1] : vector<8x128xf32> to vector<8xf32>
    %155 = vector.shape_cast %154 : vector<8xf32> to vector<8x1xf32>
    %cst_57 = arith.constant 1.280000e+02 : f32
    %156 = vector.broadcast %cst_57 : f32 to vector<8x1xf32>
    %157 = arith.divf %155, %156 : vector<8x1xf32>
    %158 = vector.broadcast %157 : vector<8x1xf32> to vector<8x128xf32>
    %159 = arith.subf %151, %158 : vector<8x128xf32>
    %160 = arith.mulf %159, %159 : vector<8x128xf32>
    %cst_58 = arith.constant dense<0.000000e+00> : vector<8xf32>
    %161 = vector.multi_reduction <add>, %160, %cst_58 [1] : vector<8x128xf32> to vector<8xf32>
    %162 = vector.shape_cast %161 : vector<8xf32> to vector<8x1xf32>
    %cst_59 = arith.constant 1.280000e+02 : f32
    %163 = vector.broadcast %cst_59 : f32 to vector<8x1xf32>
    %164 = arith.divf %162, %163 : vector<8x1xf32>
    %165 = vector.broadcast %157 : vector<8x1xf32> to vector<8x128xf32>
    %166 = arith.subf %151, %165 : vector<8x128xf32>
    %cst_60 = arith.constant 9.99999997E-7 : f32
    %167 = vector.broadcast %cst_60 : f32 to vector<8x1xf32>
    %168 = arith.addf %164, %167 : vector<8x1xf32>
    %169 = math.rsqrt %168 : vector<8x1xf32>
    %170 = vector.broadcast %169 : vector<8x1xf32> to vector<8x128xf32>
    %171 = arith.mulf %166, %170 : vector<8x128xf32>
    %172 = vector.broadcast %152 : vector<1x128xf32> to vector<8x128xf32>
    %173 = arith.mulf %171, %172 : vector<8x128xf32>
    %174 = vector.broadcast %153 : vector<1x128xf32> to vector<8x128xf32>
    %175 = arith.addf %173, %174 : vector<8x128xf32>
    %176 = arith.truncf %175 : vector<8x128xf32> to vector<8x128xbf16>
    %c0_61 = arith.constant 0 : index
    %c0_62 = arith.constant 0 : index
    %177 = vector.load %arg11[%c0_61, %c0_62] : memref<128x256xbf16, #tpu.memory_space<vmem>>, vector<128x256xbf16>
    %cst_63 = arith.constant dense<0.000000e+00> : vector<8x256xf32>
    %178 = tpu.matmul %176, %177, %cst_63 {dimension_numbers = #tpu.dot_dimension_numbers<[1], [0], [0], [1], [0, 0, 1, 1], [], []>} : vector<8x128xbf16>, vector<128x256xbf16>, vector<8x256xf32> -> vector<8x256xf32>
    %c0_64 = arith.constant 0 : index
    %c0_65 = arith.constant 0 : index
    %179 = vector.load %arg12[%c0_64, %c0_65] : memref<1x256xf32, #tpu.memory_space<vmem>>, vector<1x256xf32>
    %180 = vector.broadcast %179 : vector<1x256xf32> to vector<8x256xf32>
    %181 = arith.addf %178, %180 : vector<8x256xf32>
    %cst_66 = arith.constant 0.000000e+00 : f32
    %182 = vector.broadcast %cst_66 : f32 to vector<8x256xf32>
    %183 = arith.maximumf %181, %182 : vector<8x256xf32>
    %184 = arith.truncf %183 : vector<8x256xf32> to vector<8x256xbf16>
    %c0_67 = arith.constant 0 : index
    %c0_68 = arith.constant 0 : index
    %185 = vector.load %arg13[%c0_67, %c0_68] : memref<256x128xbf16, #tpu.memory_space<vmem>>, vector<256x128xbf16>
    %cst_69 = arith.constant dense<0.000000e+00> : vector<8x128xf32>
    %186 = tpu.matmul %184, %185, %cst_69 {dimension_numbers = #tpu.dot_dimension_numbers<[1], [0], [0], [1], [0, 0, 1, 1], [], []>} : vector<8x256xbf16>, vector<256x128xbf16>, vector<8x128xf32> -> vector<8x128xf32>
    %c0_70 = arith.constant 0 : index
    %c0_71 = arith.constant 0 : index
    %187 = vector.load %arg14[%c0_70, %c0_71] : memref<1x128xf32, #tpu.memory_space<vmem>>, vector<1x128xf32>
    %188 = vector.broadcast %187 : vector<1x128xf32> to vector<8x128xf32>
    %189 = arith.addf %186, %188 : vector<8x128xf32>
    %190 = arith.addf %151, %189 : vector<8x128xf32>
    %c0_72 = arith.constant 0 : index
    %c0_73 = arith.constant 0 : index
    %c0_74 = arith.constant 0 : index
    %191 = vector.load %arg15[%c0_72, %c0_73, %c0_74] : memref<1x8x128xf32, #tpu.memory_space<vmem>>, vector<1x8x128xf32>
    %192 = vector.shape_cast %191 : vector<1x8x128xf32> to vector<8x128xf32>
    %193 = vector.shape_cast %190 : vector<8x128xf32> to vector<1x8x128xf32>
    tpu.vector_store %arg15[%c0_72, %c0_73, %c0_74], %193 {strides = array<i32>} : memref<1x8x128xf32, #tpu.memory_space<vmem>>, vector<1x8x128xf32>,
    return
  }
  func.func @transform_0(%arg0: i32) -> (i32, i32, i32) {
    %c0_i32 = arith.constant 0 : i32
    %c0_i32_0 = arith.constant 0 : i32
    %c0_i32_1 = arith.constant 0 : i32
    return %arg0, %c0_i32, %c0_i32_0 : i32, i32, i32
  }
  func.func @transform_1(%arg0: i32) -> (i32, i32, i32) {
    %c0_i32 = arith.constant 0 : i32
    %c0_i32_0 = arith.constant 0 : i32
    %c0_i32_1 = arith.constant 0 : i32
    return %arg0, %c0_i32, %c0_i32_0 : i32, i32, i32
  }
  func.func @transform_2(%arg0: i32) -> (i32, i32) {
    %c0_i32 = arith.constant 0 : i32
    %c0_i32_0 = arith.constant 0 : i32
    %c0_i32_1 = arith.constant 0 : i32
    return %c0_i32, %c0_i32_0 : i32, i32
  }
  func.func @transform_3(%arg0: i32) -> (i32, i32) {
    %c0_i32 = arith.constant 0 : i32
    %c0_i32_0 = arith.constant 0 : i32
    %c0_i32_1 = arith.constant 0 : i32
    return %c0_i32, %c0_i32_0 : i32, i32
  }
  func.func @transform_4(%arg0: i32) -> (i32, i32) {
    %c0_i32 = arith.constant 0 : i32
    %c0_i32_0 = arith.constant 0 : i32
    %c0_i32_1 = arith.constant 0 : i32
    return %c0_i32, %c0_i32_0 : i32, i32
  }
  func.func @transform_5(%arg0: i32) -> (i32, i32) {
    %c0_i32 = arith.constant 0 : i32
    %c0_i32_0 = arith.constant 0 : i32
    %c0_i32_1 = arith.constant 0 : i32
    return %c0_i32, %c0_i32_0 : i32, i32
  }
  func.func @transform_6(%arg0: i32) -> (i32, i32) {
    %c0_i32 = arith.constant 0 : i32
    %c0_i32_0 = arith.constant 0 : i32
    %c0_i32_1 = arith.constant 0 : i32
    return %c0_i32, %c0_i32_0 : i32, i32
  }
  func.func @transform_7(%arg0: i32) -> (i32, i32) {
    %c0_i32 = arith.constant 0 : i32
    %c0_i32_0 = arith.constant 0 : i32
    %c0_i32_1 = arith.constant 0 : i32
    return %c0_i32, %c0_i32_0 : i32, i32
  }
  func.func @transform_8(%arg0: i32) -> (i32, i32) {
    %c0_i32 = arith.constant 0 : i32
    %c0_i32_0 = arith.constant 0 : i32
    %c0_i32_1 = arith.constant 0 : i32
    return %c0_i32, %c0_i32_0 : i32, i32
  }
  func.func @transform_9(%arg0: i32) -> (i32, i32) {
    %c0_i32 = arith.constant 0 : i32
    %c0_i32_0 = arith.constant 0 : i32
    %c0_i32_1 = arith.constant 0 : i32
    return %c0_i32, %c0_i32_0 : i32, i32
  }
  func.func @transform_10(%arg0: i32) -> (i32, i32) {
    %c0_i32 = arith.constant 0 : i32
    %c0_i32_0 = arith.constant 0 : i32
    %c0_i32_1 = arith.constant 0 : i32
    return %c0_i32, %c0_i32_0 : i32, i32
  }
  func.func @transform_11(%arg0: i32) -> (i32, i32) {
    %c0_i32 = arith.constant 0 : i32
    %c0_i32_0 = arith.constant 0 : i32
    %c0_i32_1 = arith.constant 0 : i32
    return %c0_i32, %c0_i32_0 : i32, i32
  }
  func.func @transform_12(%arg0: i32) -> (i32, i32) {
    %c0_i32 = arith.constant 0 : i32
    %c0_i32_0 = arith.constant 0 : i32
    %c0_i32_1 = arith.constant 0 : i32
    return %c0_i32, %c0_i32_0 : i32, i32
  }
  func.func @transform_13(%arg0: i32) -> (i32, i32) {
    %c0_i32 = arith.constant 0 : i32
    %c0_i32_0 = arith.constant 0 : i32
    %c0_i32_1 = arith.constant 0 : i32
    return %c0_i32, %c0_i32_0 : i32, i32
  }
  func.func @transform_14(%arg0: i32) -> (i32, i32, i32) {
    %c0_i32 = arith.constant 0 : i32
    %c0_i32_0 = arith.constant 0 : i32
    %c0_i32_1 = arith.constant 0 : i32
    return %arg0, %c0_i32, %c0_i32_0 : i32, i32, i32
  }
}

</mosaic_0001>

<bundles_post_ra>
// kernel: tpu_custom_call.1
= control target key start
LH: loop header
LB: loop body
LE: loop exit
PB: predicated region body
PF: predicated region fallthrough
CT: control target
= control target key end

     0   :  { %s3444_s0 = inlined_call_operand.hbm [shape: f32[2,8,128], index: 0, kind: input, shape index: {}]   ;;  %s3445_s1 = inlined_call_operand.hbm [shape: f32[2,1,8], index: 1, kind: input, shape index: {}]   ;;  %s3446_s2 = inlined_call_operand.hbm [shape: f32[1,128], index: 2, kind: input, shape index: {}]   ;;  %s3447_s3 = inlined_call_operand.hbm [shape: f32[1,128], index: 3, kind: input, shape index: {}]   ;;  %s3448_s4 = inlined_call_operand.hbm [shape: bf16[128,384], index: 4, kind: input, shape index: {}]   ;;  %s3449_s5 = inlined_call_operand.vmem [shape: f32[1,384], index: 5, kind: input, shape index: {}]   ;;  %s3450_s6 = inlined_call_operand.hbm [shape: bf16[128,128], index: 6, kind: input, shape index: {}]   ;;  %s3451_s7 = inlined_call_operand.vmem [shape: f32[1,128], index: 7, kind: input, shape index: {}]   ;;  %s3452_s8 = inlined_call_operand.vmem [shape: f32[1,128], index: 8, kind: input, shape index: {}]   ;;  %s3453_s9 = inlined_call_operand.vmem [shape: f32[1,128], index: 9, kind: input, shape index: {}]   ;;  %s3454_s10 = inlined_call_operand.hbm [shape: bf16[128,256], index: 10, kind: input, shape index: {}]   ;;  %s3455_s11 = inlined_call_operand.vmem [shape: f32[1,256], index: 11, kind: input, shape index: {}]   ;;  %s3456_s12 = inlined_call_operand.hbm [shape: bf16[256,128], index: 12, kind: input, shape index: {}]   ;;  %s3457_s13 = inlined_call_operand.vmem [shape: f32[1,128], index: 13, kind: input, shape index: {}]   ;;  %s3458_s14 = inlined_call_operand.hbm [shape: f32[2,8,128], index: 14, kind: output, shape index: {}]  }
   0x1   :  { %3469 = sst [smem:[#allocation27_spill]] %s3444_s0 }
   0x2   :  { %3470 = sst [smem:[#allocation28_spill]] %s3446_s2 }
   0x3   :  { %3471 = sst [smem:[#allocation29_spill]] %s3447_s3 }
   0x4   :  { %3472 = sst [smem:[#allocation30_spill]] %s3448_s4 }
   0x5   :  { %3473 = sst [smem:[#allocation31_spill]] %s3450_s6 }
   0x6   :  { %3474 = sst [smem:[#allocation32_spill]] %s3454_s10 }
   0x7   :  { %3475 = sst [smem:[#allocation33_spill]] %s3456_s12 }
   0x8   :  { %3476 = sst [smem:[#allocation34_spill]] %s3458_s14 }
   0x9   :  { %19 = vsyncpa [#allocation3], 0 }
   0xa   :  { %21 = vsyncpa [#allocation3 + $0x1], 0 }
   0xb   :  { %22 = vsyncpa [#allocation6], 0 }
   0xc   :  { %24 = vsyncpa [#allocation6 + $0x1], 0 }
   0xd   :  { %25 = vsyncpa [#allocation9], 0 }
   0xe   :  { %26 = vsyncpa [#allocation12], 0 }
   0xf   :  { %27 = vsyncpa [#allocation15], 0 }
  0x10   :  { %28 = vsyncpa [#allocation4], 0 }
  0x11   :  { %30 = vsyncpa [#allocation4 + $0x1], 0  ;;  %s3002_s29 = smov 0   ;;  %s3004_s30 = smov 0  }
  0x12   :  { %s3006_s15 = smov 0   ;;  %s3008_s16 = smov 0  }
  0x13 LB: > { %3477 = sst [smem:[#allocation24_spill]] %s2900_s15  ;;  %s2906_s17 = smov [#allocation7]   ;;  %s2904_s16 = sphi %s3008_s16, %s3515_s16   ;;  %s2900_s15 = sphi %s3006_s15, %s3517_s15   ;;  %s2896_s30 = sphi %s3004_s30, %s3519_s30   ;;  %s2892_s29 = sphi %s3002_s29, %s3518_s29  }
  0x14   : > { %s384_s18 = sshll.u32 %s2906_s17, 4  ;;  %s3023_s19 = sadd.s32 4294967295, %s2904_s16   ;;  %s385_s18 = int_to_ptr.vmem [resolvable:$true] %s384_s18 }
  0x15   : > { %p2119_p0 = scmp.ge.s32.totalorder %s2904_s16, 1  ;;  %p3460_p1 = scmp.eq.s32.totalorder %s3023_s19, 0 }
  0x16   : > { %p371_p2 = scmp.lt.s32.totalorder %s2904_s16, 3  ;;  %s2907_s21 = smov [#allocation8]  }
  0x17   : > { %s395_s22 = sshll.u32 %s2907_s21, 4  ;;  %s2908_s23 = smov [#allocation11]   ;;  %s396_s22 = int_to_ptr.vmem [resolvable:$true] %s395_s22 }
  0x18   : > { %p3028_p3 = pnand %p2119_p0, %p371_p2  ;;  %s421_s24 = sshll.u32 %s2908_s23, 4  ;;  %s3041_s24 = int_to_ptr.vmem [resolvable:$true] %s421_s24 }
  0x19   : > { %s2619_s27 = scalar_lea.vmem %s385_s18, 16  ;;  %s2626_s28 = scalar_lea.vmem %s385_s18, 32 }
  0x1a   : > { %s3478_s20 = scalar_select %p3028_p3, 1, 0 }
  0x1b   : > { %p2414_p5 = pneg %p3028_p3  ;;  %p2620_p8 = scmp.ne.s32.totalorder %s385_s18, %s2619_s27 }
  0x1c   : > { %p2627_p11 = scmp.lt.s32.totalorder %s385_s18, %s385_s18  ;;  %p2628_p12 = scmp.lt.s32.totalorder %s2626_s28, %s2619_s27 }
  0x1d   : > { %p3037_p6 = pnand %p2414_p5, %p3460_p1 }
  0x1e   : > { %p2629_p13 = por %p2628_p12, %p2627_p11 }
  0x1f   : > { %p3045_p7 = pneg %p3037_p6 }
  0x21   : > { %p2622_p9 = pnand %p2620_p8, %p3045_p7 }
  0x23   : > { %p2623_p10 = pneg %p2622_p9 }
  0x25   : > { %p2630_p0 = pnand %p2629_p13, %p2623_p10 }
  0x27   : > { %2633 = shalt.err (!%p2630_p0)
}
  0x28   : > { %s3481_s2 = sld [smem:[#allocation28_spill]]  ;;  %s2645_s23 = scalar_lea.vmem %s396_s22, 16 }
  0x29   : > { %p2646_p2 = scmp.ne.s32.totalorder %s396_s22, %s2645_s23  ;;  %s2652_s14 = scalar_lea.vmem %s396_s22, 32 }
  0x2a   : > { %p2653_p8 = scmp.lt.s32.totalorder %s396_s22, %s396_s22  ;;  %p2654_p9 = scmp.lt.s32.totalorder %s2652_s14, %s2645_s23 }
  0x2b   : > { %p2648_p5 = pnand %p2646_p2, %p3045_p7 }
  0x2c   : > { %p2655_p1 = por %p2654_p9, %p2653_p8 }
  0x2d   : > { %p2649_p4 = pneg %p2648_p5 }
  0x2e   : > { %2417 = dma.hbm_to_vmem [thread:$0]  (!%p3037_p6), %s3481_s2, 16, %s385_s18, [#allocation6]  }
  0x2f   : > { %p2656_p3 = pnand %p2655_p1, %p2649_p4 }
  0x31   : > { %2659 = shalt.err (!%p2656_p3)
}
  0x32   : > { %s3482_s3 = sld [smem:[#allocation29_spill]]  ;;  %s2671_s18 = scalar_lea.vmem %s3041_s24, 1024 }
  0x33   : > { %p2672_p10 = scmp.ne.s32.totalorder %s3041_s24, %s2671_s18  ;;  %p2679_p13 = scmp.lt.s32.totalorder %s3041_s24, %s3041_s24 }
  0x34   : > { %p2680_p0 = scmp.lt.s32.totalorder %s2671_s18, %s2671_s18 }
  0x35   : > { %p2674_p11 = pnand %p2672_p10, %p3045_p7 }
  0x36   : > { %p2681_p1 = por %p2680_p0, %p2679_p13 }
  0x37   : > { %p2675_p12 = pneg %p2674_p11 }
  0x38   : > { %2420 = dma.hbm_to_vmem [thread:$0]  (!%p3037_p6), %s3482_s3, 16, %s396_s22, [#allocation9]  }
  0x39   : > { %p2682_p3 = pnand %p2681_p1, %p2675_p12 }
  0x3b   : > { %2685 = shalt.err (!%p2682_p3)
}
  0x3c   : > { %s3462_s14 = smov 64   ;;  %s3463_s17 = smov 4  }
  0x3d   : > { %s3483_s6 = sld [smem:[#allocation31_spill]]  ;;  %s2911_s23 = smov [#allocation10]  }
  0x3e   : > { %s405_s27 = sshll.u32 %s2911_s23, 4  ;;  %s406_s27 = int_to_ptr.vmem [resolvable:$true] %s405_s27 }
  0x3f   : > { %s2697_s28 = scalar_lea.vmem %s406_s27, 3072  ;;  %p2705_p8 = scmp.lt.s32.totalorder %s406_s27, %s406_s27 }
  0x40   : > { %p2698_p4 = scmp.ne.s32.totalorder %s406_s27, %s2697_s28  ;;  %p2706_p9 = scmp.lt.s32.totalorder %s2697_s28, %s2697_s28 }
  0x42   : > { %p2700_p2 = pnand %p2698_p4, %p3045_p7  ;;  %p2707_p10 = por %p2706_p9, %p2705_p8 }
  0x43   : > { %2426 = dma.hbm_to_vmem [thread:$0]  (!%p3037_p6), %s3483_s6, 1024, %s3041_s24, [#allocation12], %s3462_s14, %s3462_s14, %s3463_s17  }
  0x44   : > { %p2701_p5 = pneg %p2700_p2 }
  0x46   : > { %p2708_p11 = pnand %p2707_p10, %p2701_p5 }
  0x48   : > { %2711 = shalt.err (!%p2708_p11)
}
  0x49   : > { %s2912_s18 = smov 192   ;;  %s2913_s2 = smov 12  }
  0x4a   : > { %s3484_s4 = sld [smem:[#allocation30_spill]]  ;;  %s2914_s21 = smov [#allocation13]  }
  0x4b   : > { %s443_s23 = sshll.u32 %s2914_s21, 4  ;;  %s444_s23 = int_to_ptr.vmem [resolvable:$true] %s443_s23 }
  0x4c   : > { %s2723_s14 = scalar_lea.vmem %s444_s23, 2048  ;;  %p2731_p1 = scmp.lt.s32.totalorder %s444_s23, %s444_s23 }
  0x4d   : > { %p2724_p12 = scmp.ne.s32.totalorder %s444_s23, %s2723_s14  ;;  %p2732_p3 = scmp.lt.s32.totalorder %s2723_s14, %s2723_s14 }
  0x4f   : > { %p2726_p13 = pnand %p2724_p12, %p3045_p7  ;;  %p2733_p4 = por %p2732_p3, %p2731_p1 }
  0x50   : > { %2423 = dma.hbm_to_vmem [thread:$0]  (!%p3037_p6), %s3484_s4, 3072, %s406_s27, [#allocation9], %s2912_s18, %s2912_s18, %s2913_s2  }
  0x51   : > { %p2727_p0 = pneg %p2726_p13 }
  0x53   : > { %p2734_p2 = pnand %p2733_p4, %p2727_p0 }
  0x55   : > { %2737 = shalt.err (!%p2734_p2)
}
  0x56   : > { %s2915_s28 = smov 128   ;;  %s2916_s17 = smov 8  }
  0x57   : > { %s3485_s10 = sld [smem:[#allocation32_spill]]  ;;  %s2917_s27 = smov [#allocation14]  }
  0x58   : > { %s459_s18 = sshll.u32 %s2917_s27, 4  ;;  %s460_s18 = int_to_ptr.vmem [resolvable:$true] %s459_s18 }
  0x59   : > { %s2749_s24 = scalar_lea.vmem %s460_s18, 2048  ;;  %p2757_p10 = scmp.lt.s32.totalorder %s460_s18, %s460_s18 }
  0x5a   : > { %p2750_p5 = scmp.ne.s32.totalorder %s460_s18, %s2749_s24  ;;  %p2758_p11 = scmp.lt.s32.totalorder %s2749_s24, %s2749_s24 }
  0x5c   : > { %p2752_p8 = pnand %p2750_p5, %p3045_p7  ;;  %p2759_p12 = por %p2758_p11, %p2757_p10 }
  0x5d   : > { %2429 = dma.hbm_to_vmem [thread:$0]  (!%p3037_p6), %s3485_s10, 2048, %s444_s23, [#allocation12], %s2915_s28, %s2915_s28, %s2916_s17  }
  0x5e   : > { %p2753_p9 = pneg %p2752_p8 }
  0x60   : > { %p2760_p13 = pnand %p2759_p12, %p2753_p9 }
  0x62   : > { %2763 = shalt.err (!%p2760_p13)
}
  0x63   : > { %s3486_s14 = smov 4   ;;  %s3487_s21 = smov 64  }
  0x64   : > { %s3488_s12 = sld [smem:[#allocation33_spill]]  ;;  %s2118_s25 = sadd.s32 4294967294, %s2904_s16  }
  0x65   : > { %s3104_s26 = sadd.s32 1, %s2904_s16   ;;  %s43_s28 = sadd.s32 1, %s2900_s15 }
  0x66   : > { %3489 = sst [smem:[#allocation25_spill]] %s3104_s26  ;;  %s40_s23 = ssub.s32 %s2904_s16, %s3104_s26 }
  0x67   : > { %p41_p7 = scmp.eq.s32.totalorder %s40_s23, 0  ;;  %p50_p0 = scmp.ne.s32.totalorder %s2900_s15, %s2896_s30 }
  0x68   : > { %p51_p1 = scmp.eq.s32.totalorder %s2904_s16, 0  ;;  %p56_p3 = scmp.ne.s32.totalorder %s2896_s30, %s2892_s29 }
  0x69   : > { %s3115_s2 = scalar_select %p41_p7, %s2900_s15, %s43_s28  }
  0x6a   : > { %2432 = dma.hbm_to_vmem [thread:$0]  (!%p3037_p6), %s3488_s12, 2048, %s460_s18, [#allocation15], %s3487_s21, %s3487_s21, %s3486_s14  }
  0x6b   : > { %3490 = sst [smem:[#allocation26_spill]] %s3115_s2  ;;  %p3117_p4 = por %p51_p1, %p50_p0 }
  0x6c   : > { %p3492_p2 = scmp.eq.s32.totalorder %s3023_s19, 0  ;;  %p358_p5 = scmp.eq.s32.totalorder %s3023_s19, 1 }
  0x6d   : > { %p364_p8 = scmp.eq.s32.totalorder %s2118_s25, 1  ;;  %p2450_p9 = scmp.lt.s32.totalorder %s2904_s16, 2 }
  0x6e   : > { %p3123_p6 = por %p3492_p2, %p56_p3  ;;  %s3130_s24 = sand.u32 1, %s2900_s15  }
  0x6f   : > { %p3132_p10 = por %p358_p5, %p50_p0  ;;  %p3136_p11 = por %p364_p8, %p56_p3 }
  0x70   : > { %s3493_s18 = scalar_select %p3123_p6, 1, 0 }
  0x71   : > { %s3494_s14 = scalar_select %p3132_p10, 1, 0 }
  0x72   : > { %s3495_s21 = scalar_select %p3136_p11, 1, 0 }
  0x73   : > { %s2127_s22 = sshll.u32 %s3130_s24, 3  ;;  %s2128_s17 = sshll.u32 %s2904_s16, 7 }
  0x74   : > { %s3496_s0 = sld [smem:[#allocation27_spill]]  ;;  %s480_s25 = scalar_lea.vmem [#allocation2], %s2127_s22 }
  0x75   : > { %s487_s4 = sshll.u32 %s480_s25, 4  ;;  %p3151_p12 = pnand %p2450_p9, %p3117_p4  ;;  %s3147_s4 = int_to_ptr.vmem [resolvable:$true] %s487_s4 }
  0x76   : > { %s477_s12 = scalar_lea.sflag [#allocation3], %s3130_s24 }
  0x77   : > { %p2766_p7 = pneg %p3151_p12 }
  0x7a   : > { %s3145_s3 = scalar_lea.hbm %s3496_s0, %s2128_s17  ;;  %s2769_s27 = scalar_lea.hbm %s3496_s0, 256 }
  0x7b   : > { %s2764_s2 = scalar_lea.hbm %s3145_s3, 128  ;;  %p2770_p3 = scmp.lt.s32.totalorder %s3145_s3, %s3496_s0 }
  0x7c   : > { %p2765_p13 = scmp.ne.s32.totalorder %s3145_s3, %s2764_s2  ;;  %p2771_p4 = scmp.lt.s32.totalorder %s2769_s27, %s2764_s2 }
  0x7e   : > { %p2767_p0 = pnand %p2766_p7, %p2765_p13  ;;  %p2772_p2 = por %p2771_p4, %p2770_p3 }
  0x80   : > { %p2768_p1 = pneg %p2767_p0 }
  0x82   : > { %p2773_p5 = pnand %p2772_p2, %p2768_p1 }
  0x84   : > { %2776 = shalt.err (!%p2773_p5)
}
  0x85   : > { %s2777_s25 = scalar_lea.vmem %s3147_s4, 128  ;;  %s2918_s22 = smov [#allocation2]  }
  0x86   : > { %p2778_p8 = scmp.ne.s32.totalorder %s3147_s4, %s2777_s25  ;;  %s2782_s17 = sshll.u32 %s2918_s22, 4  ;;  %s2783_s17 = int_to_ptr.vmem [resolvable:$false] %s2782_s17 }
  0x87   : > { %s2784_s10 = scalar_lea.vmem %s2783_s17, 256  ;;  %p2785_p0 = scmp.lt.s32.totalorder %s3147_s4, %s2783_s17 }
  0x88   : > { %p2780_p9 = pnand %p2778_p8, %p2766_p7  ;;  %p2786_p11 = scmp.lt.s32.totalorder %s2784_s10, %s2777_s25 }
  0x8a   : > { %p2781_p13 = pneg %p2780_p9  ;;  %p2787_p10 = por %p2786_p11, %p2785_p0 }
  0x8c   : > { %p2788_p3 = pnand %p2787_p10, %p2781_p13 }
  0x8e   : > { %2791 = shalt.err (!%p2788_p3)
}
  0x8f   : > { %2436 = dma.hbm_to_vmem [thread:$0]  (!%p3151_p12), %s3145_s3, 128, %s3147_s4, %s477_s12  }
  0x90   : > { %s2129_s2 = sshll.u32 %s2904_s16, 4  ;;  %s497_s27 = scalar_lea.vmem [#allocation5], %s3130_s24 }
  0x91   : > { %s504_s23 = sshll.u32 %s497_s27, 4  ;;  %s502_s17 = scalar_lea.hbm %s3445_s1, %s2129_s2  ;;  %s505_s23 = int_to_ptr.vmem [resolvable:$true] %s504_s23 }
  0x92   : > { %s3498_s10 = sand.u32 1, %s2904_s16   ;;  %s2792_s0 = scalar_lea.hbm %s502_s17, 16 }
  0x93   : > { %s495_s25 = scalar_lea.sflag [#allocation6], %s3498_s10  ;;  %p2793_p10 = scmp.ne.s32.totalorder %s502_s17, %s2792_s0 }
  0x94   : > { %s2797_s3 = scalar_lea.hbm %s3445_s1, 32  ;;  %p2798_p4 = scmp.lt.s32.totalorder %s502_s17, %s3445_s1 }
  0x95   : > { %p2795_p11 = pnand %p2793_p10, %p2766_p7  ;;  %p2799_p2 = scmp.lt.s32.totalorder %s2797_s3, %s2792_s0 }
  0x97   : > { %p2796_p1 = pneg %p2795_p11  ;;  %p2800_p5 = por %p2799_p2, %p2798_p4 }
  0x99   : > { %p2801_p8 = pnand %p2800_p5, %p2796_p1 }
  0x9b   : > { %2804 = shalt.err (!%p2801_p8)
}
  0x9c   : > { %s2805_s24 = scalar_lea.vmem %s505_s23, 16  ;;  %s2919_s2 = smov [#allocation5]  }
  0x9d   : > { %p2806_p9 = scmp.ne.s32.totalorder %s505_s23, %s2805_s24  ;;  %s2810_s27 = sshll.u32 %s2919_s2, 4  ;;  %s2811_s27 = int_to_ptr.vmem [resolvable:$false] %s2810_s27 }
  0x9e   : > { %s2812_s15 = scalar_lea.vmem %s2811_s27, 32  ;;  %p2813_p3 = scmp.lt.s32.totalorder %s505_s23, %s2811_s27 }
  0x9f   : > { %p2808_p13 = pnand %p2806_p9, %p2766_p7  ;;  %p2814_p10 = scmp.lt.s32.totalorder %s2812_s15, %s2805_s24 }
  0xa1   : > { %p2809_p0 = pneg %p2808_p13  ;;  %p2815_p11 = por %p2814_p10, %p2813_p3 }
  0xa3   : > { %p2816_p6 = pnand %p2815_p11, %p2809_p0 }
  0xa5   : > { %2819 = shalt.err (!%p2816_p6)
}
  0xa6   : > { %2439 = dma.hbm_to_vmem [thread:$0]  (!%p3151_p12), %s502_s17, 16, %s505_s23, %s495_s25  }
  0xa7   : > { %p3499_p1 = scmp.ne.s32.totalorder %s3478_s20, 0 }
  0xa8   : > { %s3205_s0 = sand.u32 (!%p3499_p1), 1, %s2896_s30   ;;  %p3500_p7 = scmp.ne.s32.totalorder (!%p3499_p1), %s3493_s18, 0 }
  0xa9   : > { %513 = sbr.rel (%p3499_p1) target bundleno = 3681 (0xe61), region = 76  ;;  %s2131_s26 = sshll.u32 (!%p3499_p1), %s3205_s0, 3 }
  0xaa   : > { %s516_s28 = scalar_lea.sflag (!%p3499_p1), [#allocation3], %s3205_s0  ;;  %s519_s22 = scalar_lea.vmem (!%p3499_p1), [#allocation2], %s2131_s26 }
  0xae   : > { %2863 = dma.done.wait (%p3500_p7), %s516_s28, 128  }
  0xaf   : > { %2865 = vsyncadd (%p3500_p7), %s516_s28, 4294967168  ;;  %s524_s6 = sand.u32 1, %s3023_s19   ;;  %s527_s23 = scalar_lea.vmem [#allocation5], %s3205_s0 }
  0xb0   : > { %s525_s20 = scalar_lea.sflag [#allocation6], %s524_s6 }
  0xb1   : > { %2867 = dma.done.wait (%p3500_p7), %s525_s20, 16  }
  0xb2   : > { %2869 = vsyncadd (%p3500_p7), %s525_s20, 4294967280  ;;  %p3501_p6 = scmp.eq.s32.totalorder %s3023_s19, 0 }
  0xb4   : > { %2871 = dma.done.wait (%p3501_p6), [#allocation6], 16   ;;  %p3502_p12 = pmov %p3501_p6 }
  0xb5   : > { %p3503_p4 = pmov %p3501_p6 }
  0xb6   : > { %2873 = vsyncadd (%p3502_p12), [#allocation6], 4294967280 }
  0xb7   : > { %2875 = dma.done.wait (%p3503_p4), [#allocation9], 3088   ;;  %p3504_p2 = pmov %p3503_p4 }
  0xb9   : > { %2877 = vsyncadd (%p3504_p2), [#allocation9], 4294964208  ;;  %p3505_p5 = pmov %p3504_p2 }
  0xba   : > { %p3506_p8 = pmov %p3504_p2 }
  0xbb   : > { %2879 = dma.done.wait (%p3505_p5), [#allocation12], 3072  }
  0xbc   : > { %2881 = vsyncadd (%p3506_p8), [#allocation12], 4294964224  ;;  %p3507_p9 = pmov %p3504_p2 }
  0xbd   : > { %p3508_p13 = pmov %p3504_p2 }
  0xbe   : > { %2883 = dma.done.wait (%p3507_p9), [#allocation15], 2048  }
  0xbf   : > { %2885 = vsyncadd (%p3508_p13), [#allocation15], 4294965248  ;;  %v3237_v0 = vld [vmem:[%s519_s22] sm:$0xff]  ;;  %v2920_v3 = vmov 0.0   ;;  %v2921_v22 = vmov 0   ;;  %vm2922_vm0 = vmmov 0   ;;  %v665_v41 = vlaneseq }
  0xc0   : > { %604 = vadd.xlane.f32.xlu0 %v3237_v0  ;;  %v2508_v1 = vld [vmem:[#allocation10 + $0xac] ss:$12 sps:$4 sm:$0xff]   ;;  %v2510_v2 = vld [vmem:[#allocation10 + $0xa8] ss:$12 sps:$4 sm:$0xff]   ;;  %2284 = vmatprep.subr.bf16.mxu1 %v2920_v3  ;;  %v2511_v4 = vld [vmem:[#allocation10 + $0xb0] ss:$12 sps:$4 sm:$0xff]  }
  0xc1   : > { %v2512_v5 = vld [vmem:[#allocation10 + $0x94] ss:$12 sps:$4 sm:$0xff]   ;;  %v2514_v6 = vld [vmem:[#allocation10 + $0x90] ss:$12 sps:$4 sm:$0xff]   ;;  %808 = vmatprep.subr.bf16.mxu0 %v2508_v1  ;;  %v2515_v7 = vld [vmem:[#allocation10 + $0x98] ss:$12 sps:$4 sm:$0xff]   ;;  %2285 = vmatpush3.bf16.msra.mxu1 %v2511_v4 }
  0xc2   : > { %809 = vmatpush1.bf16.msra.mxu0 %v2510_v2  ;;  %2286 = vmatprep.subr.bf16.mxu1 %v2920_v3  ;;  %v2516_v12 = vld [vmem:[#allocation10 + $0x7c] ss:$12 sps:$4 sm:$0xff]   ;;  %v2518_v13 = vld [vmem:[#allocation10 + $0x78] ss:$12 sps:$4 sm:$0xff]   ;;  %v2519_v14 = vld [vmem:[#allocation10 + $0x80] ss:$12 sps:$4 sm:$0xff]  }
  0xc3   : > { %810 = vmatprep.subr.bf16.mxu0 %v2512_v5  ;;  %v2520_v15 = vld [vmem:[#allocation10 + $0x64] ss:$12 sps:$4 sm:$0xff]   ;;  %v2522_v16 = vld [vmem:[#allocation10 + $0x60] ss:$12 sps:$4 sm:$0xff]   ;;  %v2523_v17 = vld [vmem:[#allocation10 + $0x68] ss:$12 sps:$4 sm:$0xff]   ;;  %840 = vmatprep.mubr.bf16.mxu0 %v2921_v22 }
  0xc4   : > { %v2524_v18 = vld [vmem:[#allocation10 + $0x4c] ss:$12 sps:$4 sm:$0xff]   ;;  %v2526_v19 = vld [vmem:[#allocation10 + $0x48] ss:$12 sps:$4 sm:$0xff]   ;;  %v2527_v20 = vld [vmem:[#allocation10 + $0x50] ss:$12 sps:$4 sm:$0xff]   ;;  %2300 = vmatprep.mubr.msk.bf16.mxu1 %vm2922_vm0, %v2920_v3 }
  0xc5   : > { %2287 = vmatpush3.bf16.msra.mxu1 %v2515_v7  ;;  %v2528_v21 = vld [vmem:[#allocation10 + $0x34] ss:$12 sps:$4 sm:$0xff]   ;;  %v2530_v23 = vld [vmem:[#allocation10 + $0x30] ss:$12 sps:$4 sm:$0xff]   ;;  %v2531_v24 = vld [vmem:[#allocation10 + $0x38] ss:$12 sps:$4 sm:$0xff]  }
  0xc6   : > { %811 = vmatpush1.bf16.msra.mxu0 %v2514_v6  ;;  %2288 = vmatprep.subr.bf16.mxu1 %v2920_v3  ;;  %v2532_v25 = vld [vmem:[#allocation10 + $0x1c] ss:$12 sps:$4 sm:$0xff]   ;;  %v2534_v26 = vld [vmem:[#allocation10 + $0x18] ss:$12 sps:$4 sm:$0xff]   ;;  %v2535_v27 = vld [vmem:[#allocation10 + $0x20] ss:$12 sps:$4 sm:$0xff]  }
  0xc7   : > { %812 = vmatprep.subr.bf16.mxu0 %v2516_v12  ;;  %v2536_v28 = vld [vmem:[#allocation10 + $0x4] ss:$12 sps:$4 sm:$0xff]   ;;  %v2538_v29 = vld [vmem:[#allocation10] ss:$12 sps:$4 sm:$0xff]   ;;  %v2539_v30 = vld [vmem:[#allocation10 + $0x8] ss:$12 sps:$4 sm:$0xff]  }
  0xc8   : > { %v2139_v35 = vld [vmem:[#allocation7] ss:$0 sm:$0xff]  ;;  %v2140_v37 = vld [vmem:[#allocation8] ss:$0 sm:$0xff]  ;;  %v3258_v42 = vshrl.u32 %v665_v41, 7  ;;  %vm981_vm1 = vcmask 1043456  }
  0xc9   : > { %2289 = vmatpush3.bf16.msra.mxu1 %v2519_v14  ;;  %v663_v44 = vld [vmem:[%s3449_s5] sm:$0x7]  ;;  %vm910_vm2 = vcmask 261120   ;;  %s2923_s10 = smov 96   ;;  %vm965_vm5 = vcmask 64512   ;;  %s2924_s25 = smov 64  }
  0xca   : > { %813 = vmatpush1.bf16.msra.mxu0 %v2518_v13  ;;  %2290 = vmatprep.subr.bf16.mxu1 %v2920_v3  ;;  %v675_v43 = vsub.s32 2, %v3258_v42  ;;  %v671_v45 = vsub.s32 1, %v3258_v42  ;;  %v3266_v46 = vsub.s32 0, %v3258_v42  ;;  %v889_v7 = vld [vmem:[%s527_s23] sm:$0x1]  ;;  %v2543_v41 = vld [vmem:[#allocation11 + $0x10] sm:$0xff]  }
  0xcb   : > { %814 = vmatprep.subr.bf16.mxu0 %v2520_v15  ;;  %vm890_vm3 = vcmp.ne.f32.partialorder %v889_v7, 0.0  ;;  %s2925_s3 = smov 32   ;;  %v2204_v42 = vld [vmem:[%s3457_s13] ss:$0 sm:$0xff]  ;;  %s2222_s23 = sshll.u32 %s3023_s19, 7 }
  0xcc   : > { %v676_v47 = vrot.slane %v663_v44, %v675_v43  ;;  %v672_v48 = vrot.slane %v663_v44, %v671_v45  ;;  %v668_v51 = vrot.slane %v663_v44, %v3266_v46  ;;  %s599_s18 = scalar_lea.vmem [#allocation16], %s2131_s26  ;;  %s1958_s12 = scalar_lea.sflag [#allocation4], %s3205_s0 }
  0xcd   : > { %2291 = vmatpush3.bf16.msra.mxu1 %v2523_v17  ;;  %s1971_s17 = sshll.u32 %s599_s18, 4  ;;  %p3512_p3 = scmp.ne.s32.totalorder %s3494_s14, 0  ;;  %s1972_s17 = int_to_ptr.vmem [resolvable:$true] %s1971_s17 }
  0xce   : > { %815 = vmatpush1.bf16.msra.mxu0 %v2522_v16  ;;  %2292 = vmatprep.subr.bf16.mxu1 %v2920_v3  ;;  %s2820_s24 = scalar_lea.vmem %s1972_s17, 128  ;;  %s2926_s19 = smov [#allocation16]  }
  0xcf   : > { %816 = vmatprep.subr.bf16.mxu0 %v2524_v18  ;;  %p2821_p0 = scmp.ne.s32.totalorder %s1972_s17, %s2820_s24  ;;  %s2824_s2 = sshll.u32 %s2926_s19, 4  ;;  %s2825_s2 = int_to_ptr.vmem [resolvable:$false] %s2824_s2 }
  0xd0   : > { %s2826_s26 = scalar_lea.vmem %s2825_s2, 256  ;;  %p2827_p1 = scmp.lt.s32.totalorder %s1972_s17, %s2825_s2 }
  0xd1   : > { %2293 = vmatpush3.bf16.msra.mxu1 %v2527_v20  ;;  %p2822_p10 = pnand %p2821_p0, %p3512_p3  ;;  %p2828_p7 = scmp.lt.s32.totalorder %s2826_s26, %s2820_s24 }
  0xd2   : > { %817 = vmatpush1.bf16.msra.mxu0 %v2526_v19  ;;  %2294 = vmatprep.subr.bf16.mxu1 %v2920_v3 }
  0xd3   : > { %818 = vmatprep.subr.bf16.mxu0 %v2528_v21  ;;  %p2823_p11 = pneg %p2822_p10  ;;  %p2829_p6 = por %p2828_p7, %p2827_p1 }
  0xd5   : > { %2295 = vmatpush3.bf16.msra.mxu1 %v2531_v24  ;;  %p2830_p12 = pnand %p2829_p6, %p2823_p11 }
  0xd6   : > { %819 = vmatpush1.bf16.msra.mxu0 %v2530_v23  ;;  %2296 = vmatprep.subr.bf16.mxu1 %v2920_v3 }
  0xd7   : > { %820 = vmatprep.subr.bf16.mxu0 %v2532_v25 }
  0xd9   : > { %2297 = vmatpush3.bf16.msra.mxu1 %v2535_v27 }
  0xda   : > { %821 = vmatpush1.bf16.msra.mxu0 %v2534_v26  ;;  %2298 = vmatprep.subr.bf16.mxu1 %v2920_v3 }
  0xdb   : > { %822 = vmatprep.subr.bf16.mxu0 %v2536_v28 }
  0xdd   : > { %2299 = vmatpush3.bf16.msra.mxu1 %v2539_v30 }
  0xde   : > { %823 = vmatpush1.bf16.msra.mxu0 %v2538_v29  ;;  %2310 = vmatprep.subr.bf16.mxu1 %v2920_v3 }
  0xdf   : > { %2304 = vmatprep.subr.bf16.mxu0 %v2920_v3 }
 0x149   : > { %v605_v8 = vpop.xlane.xlu0 %604 }
 0x14a   : > { %v607_v9 = vmul.f32 0.0078125, %v605_v8  ;;  %v958_v8 = vsel %vm890_vm3, 1, %v2921_v22 }
 0x14c   : > { %v608_v10 = vsub.f32 %v3237_v0, %v607_v9  ;;  %v962_v9 = vrot.slane %v958_v8, %v3266_v46 }
 0x14e   : > { %v609_v11 = vmul.f32 %v608_v10, %v608_v10  ;;  %vm3300_vm4 = vcmp.eq.s32.totalorder %v962_v9, 1 }
 0x150   : > { %610 = vadd.xlane.f32.xlu0 %v609_v11 }
 0x1d9   : > { %v611_v31 = vpop.xlane.xlu0 %610 }
 0x1da   : > { %v612_v32 = vmul.f32 0.0078125, %v611_v31 }
 0x1dc   : > { %v613_v33 = vadd.f32 1e-06, %v612_v32 }
 0x1de   : > { %2588 = vrsqrt.f32 %v613_v33 }
 0x1eb   : > { %v2589_v34 = vpop.eup %2588 }
 0x1ec   : > { %v615_v36 = vmul.f32 %v2589_v34, %v608_v10 }
 0x1ee   : > { %v622_v38 = vmul.f32 %v2139_v35, %v615_v36 }
 0x1f0   : > { %v629_v39 = vadd.f32 %v2140_v37, %v622_v38 }
 0x1f2   : > { %v630_v40 = vpack.c.bf16 %v629_v39, %v629_v39 }
 0x1f4   : > { %841 = vmatmul.mubr.bf16.vlgmr.msra.gmra.mxu0 %v630_v40  ;;  %2301 = vmatmul.mubr.bf16.vlgmr.msra.gmra.mxu1 %v630_v40  ;;  %v2542_v40 = vld [vmem:[#allocation11 + $0x18] sm:$0xff]  }
 0x1f5   : > { %2306 = vmatprep.mubr.msk.bf16.mxu0 %vm2922_vm0, %v2920_v3  ;;  %2312 = vmatprep.mubr.msk.bf16.mxu1 %vm2922_vm0, %v2920_v3 }
 0x2b4   : > { %v842_v49 = vpop.f32.mrf.mxu0  ;;  %v883_v50 = vpop.f32.mrf.mxu1 }
 0x2b5   : > { %v884_v52 = vadd.f32 %v883_v50, %v676_v47  ;;  %v843_v59 = vadd.f32 %v842_v49, %v668_v51  ;;  %v2540_v50 = vld [vmem:[#allocation11 + $0x8] sm:$0xff]  }
 0x2b6   : > { %v844_v53 = vpop.f32.mrf.mxu0  ;;  %v2302_v54 = vpop.f32.mrf.mxu1 }
 0x2b7   : > { %v3271_v55 = vpack.c.bf16 %v884_v52, %v884_v52  ;;  %v845_v56 = vadd.f32 %v844_v53, %v672_v48  ;;  %v3282_v2 = vpack.c.bf16 %v843_v59, %v843_v59  ;;  %v2541_v52 = vld [vmem:[#allocation11] sm:$0xff]  }
 0x2b8   : > { %v846_v57 = vpop.f32.mrf.mxu0  ;;  %v886_v58 = vpop.f32.mrf.mxu1 }
 0x2b9   : > { %v3273_v60 = vpack.c.bf16 %v845_v56, %v845_v56  ;;  %v983_v61 = vsel %vm981_vm1, %v3271_v55, 0 }
 0x2ba   : > { %v847_v62 = vpop.f32.mrf.mxu0  ;;  %v2303_v63 = vpop.f32.mrf.mxu1  ;;  %2311 = vmatpush3.bf16.msra.mxu1 %v983_v61 }
 0x2bb   : > { %1030 = vrot.lane.b32.xlu1 %v3273_v60, %s2923_s10  ;;  %v915_v1 = vsel %vm910_vm2, %v3273_v60, 0  ;;  %2322 = vmatprep.subr.bf16.mxu1 %v2920_v3 }
 0x2bc   : > { %2305 = vmatpush3.bf16.xpose.msra.mxu0 %v915_v1 }
 0x2bd   : > { %2316 = vmatprep.subr.bf16.mxu0 %v2920_v3 }
 0x2bf   : > { %1027 = vrot.lane.b32.xlu1 %v3282_v2, %s2923_s10 }
 0x2c3   : > { %2307 = vmatmul.mubr.msk.bf16.vlgmr.msra.gmra.mxu0 %vm910_vm2, %v3282_v2 }
 0x2c4   : > { %2318 = vmatprep.mubr.msk.bf16.mxu0 %vm2922_vm0, %v2920_v3 }
 0x32d   : > { %v1031_v4 = vpop.permute.xlu1 %1030 }
 0x32e   : > { %v1036_v5 = vsel %vm910_vm2, %v1031_v4, 0 }
 0x32f   : > { %2317 = vmatpush3.bf16.xpose.msra.mxu0 %v1036_v5 }
 0x330   : > { %2328 = vmatprep.subr.bf16.mxu0 %v2920_v3 }
 0x331   : > { %v1028_v6 = vpop.permute.xlu1 %1027 }
 0x336   : > { %2319 = vmatmul.mubr.msk.bf16.vlgmr.msra.gmra.mxu0 %vm910_vm2, %v1028_v6 }
 0x337   : > { %2332 = vmatprep.mubr.msk.bf16.mxu0 %vm2922_vm0, %v2920_v3  ;;  %2329 = vmatpush3.bf16.msra.mxu0 %v2542_v40 }
 0x338   : > { %2330 = vmatprep.subr.bf16.mxu0 %v2920_v3 }
 0x33b   : > { %2331 = vmatpush3.bf16.msra.mxu0 %v2543_v41 }
 0x33c   : > { %2344 = vmatprep.subr.bf16.mxu0 %v2920_v3 }
 0x383   : > { %v951_v10 = vpop.f32.mrf.mxu0 }
 0x384   : > { %v957_v12 = vmul.f32 0.17677669, %v951_v10 }
 0x385   : > { %v2308_v13 = vpop.f32.mrf.mxu0 }
 0x386   : > { %v964_v14 = vsel %vm3300_vm4, %v957_v12, -1e+09 }
 0x387   : > { %v954_v15 = vpop.f32.mrf.mxu0  ;;  %v966_v16 = vsel %vm965_vm5, %v964_v14, -inf }
 0x388   : > { %967 = vmax.xlane.f32.xlu0 %v966_v16 }
 0x389   : > { %v2309_v17 = vpop.f32.mrf.mxu0 }
 0x3f6   : > { %v1072_v18 = vpop.f32.mrf.mxu0 }
 0x3f7   : > { %v1078_v19 = vmul.f32 0.17677669, %v1072_v18 }
 0x3f8   : > { %v2320_v20 = vpop.f32.mrf.mxu0 }
 0x3f9   : > { %v1079_v21 = vsel %vm3300_vm4, %v1078_v19, -1e+09 }
 0x3fa   : > { %v1075_v23 = vpop.f32.mrf.mxu0  ;;  %v1080_v24 = vsel %vm965_vm5, %v1079_v21, -inf }
 0x3fb   : > { %1081 = vmax.xlane.f32.xlu1 %v1080_v24 }
 0x3fc   : > { %v2321_v25 = vpop.f32.mrf.mxu0 }
 0x40c   : > { %1252 = vrot.lane.b32.xlu1 %v3282_v2, %s2924_s25 }
 0x411   : > { %v968_v26 = vpop.xlane.xlu0 %967 }
 0x412   : > { %v969_v27 = vsub.f32 %v964_v14, %v968_v26 }
 0x414   : > { %v970_v28 = vmul.f32 1.442695, %v969_v27 }
 0x416   : > { %2590 = vpow2.f32 %v970_v28 }
 0x423   : > { %v2591_v29 = vpop.eup %2590 }
 0x424   : > { %v972_v30 = vsel %vm965_vm5, %v2591_v29, 0.0 }
 0x425   : > { %973 = vadd.xlane.f32.xlu0 %v972_v30 }
 0x484   : > { %v1082_v31 = vpop.xlane.xlu1 %1081 }
 0x485   : > { %v1083_v32 = vsub.f32 %v1079_v21, %v1082_v31  ;;  %v2544_v31 = vld [vmem:[#allocation11 + $0x28] sm:$0xff]  }
 0x487   : > { %v1084_v33 = vmul.f32 1.442695, %v1083_v32 }
 0x488   : > { %v1253_v6 = vpop.permute.xlu1 %1252 }
 0x489   : > { %2592 = vpow2.f32 %v1084_v33 }
 0x496   : > { %v2593_v34 = vpop.eup %2592 }
 0x497   : > { %v1086_v35 = vsel %vm965_vm5, %v2593_v34, 0.0 }
 0x498   : > { %1087 = vadd.xlane.f32.xlu0 %v1086_v35 }
 0x4ae   : > { %v974_v36 = vpop.xlane.xlu0 %973  ;;  %1093 = vrot.lane.b32.xlu0 %v3271_v55, %s2923_s10 }
 0x4af   : > { %2594 = vrcp.f32 %v974_v36 }
 0x4b2   : > { %1254 = vrot.lane.b32.xlu0 %v3273_v60, %s2924_s25 }
 0x4bc   : > { %v2595_v37 = vpop.eup %2594 }
 0x4bd   : > { %v976_v38 = vmul.f32 %v2595_v37, %v2591_v29  ;;  %v2545_v37 = vld [vmem:[#allocation11 + $0x20] sm:$0xff]  }
 0x4bf   : > { %v977_v39 = vpack.c.bf16 %v976_v38, %v976_v38 }
 0x4c1   : > { %2313 = vmatmul.mubr.msk.bf16.vlgmr.msra.gmra.mxu1 %vm965_vm5, %v977_v39 }
 0x4c2   : > { %2324 = vmatprep.mubr.msk.bf16.mxu1 %vm2922_vm0, %v2920_v3 }
 0x521   : > { %v1088_v43 = vpop.xlane.xlu0 %1087 }
 0x522   : > { %2596 = vrcp.f32 %v1088_v43 }
 0x525   : > { %v1094_v44 = vpop.permute.xlu0 %1093 }
 0x526   : > { %v1099_v47 = vsel %vm981_vm1, %v1094_v44, 0 }
 0x527   : > { %2323 = vmatpush3.bf16.msra.mxu1 %v1099_v47 }
 0x528   : > { %2336 = vmatprep.subr.bf16.mxu1 %v2920_v3 }
 0x529   : > { %v1255_v59 = vpop.permute.xlu0 %1254 }
 0x52a   : > { %v1260_v1 = vsel %vm910_vm2, %v1255_v59, 0 }
 0x52f   : > { %v2597_v48 = vpop.eup %2596 }
 0x530   : > { %v1090_v49 = vmul.f32 %v2597_v48, %v2593_v34 }
 0x532   : > { %v1091_v51 = vpack.c.bf16 %v1090_v49, %v1090_v49 }
 0x534   : > { %2325 = vmatmul.mubr.msk.bf16.vlgmr.msra.gmra.mxu1 %vm965_vm5, %v1091_v51 }
 0x535   : > { %2337 = vmatpush3.bf16.msra.mxu1 %v2540_v50  ;;  %2340 = vmatprep.mubr.msk.bf16.mxu1 %vm2922_vm0, %v2920_v3 }
 0x536   : > { %2338 = vmatprep.subr.bf16.mxu1 %v2920_v3 }
 0x539   : > { %2339 = vmatpush3.bf16.msra.mxu1 %v2541_v52 }
 0x53a   : > { %2350 = vmatprep.subr.bf16.mxu1 %v2920_v3 }
 0x581   : > { %v1019_v53 = vpop.f32.mrf.mxu1 }
 0x582   : > { %v1025_v54 = vpack.c.bf16 %v1019_v53, %v1019_v53 }
 0x583   : > { %v2314_v56 = vpop.f32.mrf.mxu1 }
 0x584   : > { %2341 = vmatmul.mubr.msk.bf16.vlgmr.msra.gmra.mxu1 %vm910_vm2, %v1025_v54 }
 0x585   : > { %v1022_v57 = vpop.f32.mrf.mxu1  ;;  %2352 = vmatprep.mubr.msk.bf16.mxu1 %vm2922_vm0, %v2920_v3 }
 0x587   : > { %v2315_v58 = vpop.f32.mrf.mxu1 }
 0x5f4   : > { %v1135_v61 = vpop.f32.mrf.mxu1 }
 0x5f5   : > { %v1141_v62 = vpack.c.bf16 %v1135_v61, %v1135_v61 }
 0x5f6   : > { %v2326_v63 = vpop.f32.mrf.mxu1 }
 0x5f7   : > { %2333 = vmatmul.mubr.msk.bf16.vlgmr.msra.gmra.mxu0 %vm910_vm2, %v1141_v62 }
 0x5f8   : > { %2345 = vmatpush3.bf16.xpose.msra.mxu0 %v1260_v1  ;;  %v1138_v4 = vpop.f32.mrf.mxu1  ;;  %2346 = vmatprep.mubr.msk.bf16.mxu0 %vm2922_vm0, %v2920_v3 }
 0x5f9   : > { %2356 = vmatprep.subr.bf16.mxu0 %v2920_v3  ;;  %v2546_v4 = vld [vmem:[#allocation11 + $0x38] sm:$0xff]  }
 0x5fa   : > { %v2327_v5 = vpop.f32.mrf.mxu1 }
 0x5ff   : > { %2347 = vmatmul.mubr.msk.bf16.vlgmr.msra.gmra.mxu0 %vm910_vm2, %v1253_v6 }
 0x600   : > { %2360 = vmatprep.mubr.msk.bf16.mxu0 %vm2922_vm0, %v2920_v3  ;;  %2357 = vmatpush3.bf16.msra.mxu0 %v2544_v31 }
 0x601   : > { %2358 = vmatprep.subr.bf16.mxu0 %v2920_v3 }
 0x604   : > { %2359 = vmatpush3.bf16.msra.mxu0 %v2545_v37  ;;  %v2568_v37 = vld [vmem:[#allocation13 + $0x14] ss:$8 sps:$4 sm:$0xff]  }
 0x605   : > { %2370 = vmatprep.subr.bf16.mxu0 %v2920_v3 }
 0x644   : > { %v3341_v7 = vpop.f32.mrf.mxu1 }
 0x646   : > { %v2342_v8 = vpop.f32.mrf.mxu1 }
 0x648   : > { %v1249_v9 = vpop.f32.mrf.mxu1 }
 0x64a   : > { %v2343_v10 = vpop.f32.mrf.mxu1 }
 0x6b7   : > { %v3343_v12 = vpop.f32.mrf.mxu0 }
 0x6b8   : > { %v1247_v61 = vadd.f32 %v3341_v7, %v3343_v12 }
 0x6b9   : > { %v2334_v13 = vpop.f32.mrf.mxu0 }
 0x6ba   : > { %v2547_v13 = vld [vmem:[#allocation11 + $0x30] sm:$0xff]  }
 0x6bb   : > { %v1194_v14 = vpop.f32.mrf.mxu0 }
 0x6bd   : > { %v2335_v15 = vpop.f32.mrf.mxu0 }
 0x6bf   : > { %v1296_v16 = vpop.f32.mrf.mxu0 }
 0x6c0   : > { %v1302_v17 = vmul.f32 0.17677669, %v1296_v16 }
 0x6c1   : > { %v2348_v18 = vpop.f32.mrf.mxu0 }
 0x6c2   : > { %v1303_v19 = vsel %vm3300_vm4, %v1302_v17, -1e+09 }
 0x6c3   : > { %v1299_v20 = vpop.f32.mrf.mxu0  ;;  %v1304_v21 = vsel %vm965_vm5, %v1303_v19, -inf }
 0x6c4   : > { %1305 = vmax.xlane.f32.xlu0 %v1304_v21 }
 0x6c5   : > { %v2349_v23 = vpop.f32.mrf.mxu0 }
 0x6da   : > { %1316 = vrot.lane.b32.xlu0 %v3271_v55, %s2924_s25 }
 0x6de   : > { %1421 = vrot.lane.b32.xlu0 %v3282_v2, %s2925_s3 }
 0x74d   : > { %v1306_v24 = vpop.xlane.xlu0 %1305 }
 0x74e   : > { %v1307_v25 = vsub.f32 %v1303_v19, %v1306_v24  ;;  %v2185_v19 = vld [vmem:[%s3451_s7] ss:$0 sm:$0xff]  ;;  %v2548_v24 = vld [vmem:[#allocation13 + $0x70] ss:$8 sps:$4 sm:$0xff]  }
 0x750   : > { %v1308_v26 = vmul.f32 1.442695, %v1307_v25  ;;  %v2550_v25 = vld [vmem:[#allocation13 + $0x74] ss:$8 sps:$4 sm:$0xff]  }
 0x751   : > { %v1317_v27 = vpop.permute.xlu0 %1316 }
 0x752   : > { %2598 = vpow2.f32 %v1308_v26  ;;  %v1322_v28 = vsel %vm981_vm1, %v1317_v27, 0  ;;  %v2553_v26 = vld [vmem:[#allocation13 + $0x64] ss:$8 sps:$4 sm:$0xff]   ;;  %v2551_v27 = vld [vmem:[#allocation13 + $0x60] ss:$8 sps:$4 sm:$0xff]  }
 0x753   : > { %2351 = vmatpush3.bf16.msra.mxu1 %v1322_v28 }
 0x754   : > { %2364 = vmatprep.subr.bf16.mxu1 %v2920_v3 }
 0x75f   : > { %v2599_v29 = vpop.eup %2598 }
 0x760   : > { %v1310_v30 = vsel %vm965_vm5, %v2599_v29, 0.0 }
 0x761   : > { %1311 = vadd.xlane.f32.xlu1 %v1310_v30 }
 0x772   : > { %1423 = vrot.lane.b32.xlu1 %v3273_v60, %s2925_s3  ;;  %v1422_v60 = vpop.permute.xlu0 %1421 }
 0x7ea   : > { %v1312_v2 = vpop.xlane.xlu1 %1311 }
 0x7eb   : > { %2600 = vrcp.f32 %v1312_v2  ;;  %v2554_v2 = vld [vmem:[#allocation13 + $0x50] ss:$8 sps:$4 sm:$0xff]  }
 0x7ee   : > { %v1424_v34 = vpop.permute.xlu1 %1423 }
 0x7ef   : > { %v1429_v36 = vsel %vm910_vm2, %v1424_v34, 0  ;;  %v2562_v34 = vld [vmem:[#allocation13 + $0x34] ss:$8 sps:$4 sm:$0xff]  }
 0x7f8   : > { %v2601_v32 = vpop.eup %2600 }
 0x7f9   : > { %v1314_v33 = vmul.f32 %v2601_v32, %v2599_v29  ;;  %v2557_v32 = vld [vmem:[#allocation13 + $0x40] ss:$8 sps:$4 sm:$0xff]  }
 0x7fb   : > { %v1315_v35 = vpack.c.bf16 %v1314_v33, %v1314_v33  ;;  %v2559_v33 = vld [vmem:[#allocation13 + $0x44] ss:$8 sps:$4 sm:$0xff]  }
 0x7fd   : > { %2353 = vmatmul.mubr.msk.bf16.vlgmr.msra.gmra.mxu1 %vm965_vm5, %v1315_v35  ;;  %v2560_v35 = vld [vmem:[#allocation13 + $0x30] ss:$8 sps:$4 sm:$0xff]  }
 0x7fe   : > { %2365 = vmatpush3.bf16.xpose.msra.mxu1 %v1429_v36  ;;  %2366 = vmatprep.mubr.msk.bf16.mxu1 %vm2922_vm0, %v2920_v3  ;;  %v2565_v36 = vld [vmem:[#allocation13 + $0x24] ss:$8 sps:$4 sm:$0xff]  }
 0x7ff   : > { %2376 = vmatprep.subr.bf16.mxu1 %v2920_v3 }
 0x805   : > { %2367 = vmatmul.mubr.msk.bf16.vlgmr.msra.gmra.mxu1 %vm910_vm2, %v1422_v60  ;;  %v2563_v60 = vld [vmem:[#allocation13 + $0x20] ss:$8 sps:$4 sm:$0xff]  }
 0x806   : > { %2380 = vmatprep.mubr.msk.bf16.mxu1 %vm2922_vm0, %v2920_v3  ;;  %2377 = vmatpush3.bf16.msra.mxu1 %v2546_v4 }
 0x807   : > { %2378 = vmatprep.subr.bf16.mxu1 %v2920_v3 }
 0x80a   : > { %2379 = vmatpush3.bf16.msra.mxu1 %v2547_v13 }
 0x8bd   : > { %v1358_v38 = vpop.f32.mrf.mxu1 }
 0x8be   : > { %v1364_v39 = vpack.c.bf16 %v1358_v38, %v1358_v38  ;;  %v2566_v38 = vld [vmem:[#allocation13 + $0x10] ss:$8 sps:$4 sm:$0xff]  }
 0x8bf   : > { %v2354_v40 = vpop.f32.mrf.mxu1 }
 0x8c0   : > { %2361 = vmatmul.mubr.msk.bf16.vlgmr.msra.gmra.mxu0 %vm910_vm2, %v1364_v39  ;;  %v2571_v39 = vld [vmem:[#allocation13 + $0x4] ss:$8 sps:$4 sm:$0xff]   ;;  %v2569_v40 = vld [vmem:[#allocation13] ss:$8 sps:$4 sm:$0xff]  }
 0x8c1   : > { %v1361_v41 = vpop.f32.mrf.mxu1  ;;  %2372 = vmatprep.mubr.msk.bf16.mxu0 %vm2922_vm0, %v2920_v3 }
 0x8c2   : > { %v2572_v41 = vld [vmem:[#allocation14 + $0x78] sm:$0xff]  }
 0x8c3   : > { %v2355_v43 = vpop.f32.mrf.mxu1  ;;  %2262 = vmatprep.subr.bf16.mxu1 %v2572_v41 }
 0x8c4   : > { %v2573_v43 = vld [vmem:[#allocation14 + $0x38] sm:$0xff]  }
 0x8c5   : > { %v1465_v44 = vpop.f32.mrf.mxu1 }
 0x8c6   : > { %v1471_v47 = vmul.f32 0.17677669, %v1465_v44  ;;  %v2574_v44 = vld [vmem:[#allocation14 + $0x70] sm:$0xff]  }
 0x8c7   : > { %v2368_v48 = vpop.f32.mrf.mxu1 }
 0x8c8   : > { %v1472_v49 = vsel %vm3300_vm4, %v1471_v47, -1e+09  ;;  %v2575_v47 = vld [vmem:[#allocation14 + $0x30] sm:$0xff]   ;;  %v2576_v48 = vld [vmem:[#allocation14 + $0x68] sm:$0xff]  }
 0x8c9   : > { %v1468_v50 = vpop.f32.mrf.mxu1  ;;  %v1473_v51 = vsel %vm965_vm5, %v1472_v49, -inf }
 0x8ca   : > { %1474 = vmax.xlane.f32.xlu0 %v1473_v51  ;;  %v2578_v50 = vld [vmem:[#allocation14 + $0x60] sm:$0xff]  }
 0x8cb   : > { %v2369_v52 = vpop.f32.mrf.mxu1  ;;  %v2579_v51 = vld [vmem:[#allocation14 + $0x20] sm:$0xff]  }
 0x8cc   : > { %v2580_v52 = vld [vmem:[#allocation14 + $0x58] sm:$0xff]  }
 0x8e0   : > { %1485 = vrot.lane.b32.xlu0 %v3271_v55, %s2925_s3  ;;  %s3511_s3 = sld [smem:[#allocation34_spill]] }
 0x8e6   : > { %s1969_s4 = scalar_lea.hbm %s3511_s3, %s2222_s23 }
 0x953   : > { %v1475_v53 = vpop.xlane.xlu0 %1474 }
 0x954   : > { %v1476_v54 = vsub.f32 %v1472_v49, %v1475_v53  ;;  %v2577_v49 = vld [vmem:[#allocation14 + $0x28] sm:$0xff]   ;;  %v2581_v53 = vld [vmem:[#allocation14 + $0x18] sm:$0xff]  }
 0x956   : > { %v1477_v56 = vmul.f32 1.442695, %v1476_v54  ;;  %v2582_v54 = vld [vmem:[#allocation14 + $0x50] sm:$0xff]  }
 0x957   : > { %v1486_v57 = vpop.permute.xlu0 %1485 }
 0x958   : > { %2602 = vpow2.f32 %v1477_v56  ;;  %v1491_v58 = vsel %vm981_vm1, %v1486_v57, 0  ;;  %v2583_v56 = vld [vmem:[#allocation14 + $0x10] sm:$0xff]  }
 0x959   : > { %2371 = vmatpush3.bf16.msra.mxu0 %v1491_v58 }
 0x95a   : > { %1735 = vmatprep.subr.bf16.mxu0 %v2550_v25 }
 0x965   : > { %v2603_v59 = vpop.eup %2602 }
 0x966   : > { %v1479_v11 = vsel %vm965_vm5, %v2603_v59, 0.0 }
 0x967   : > { %1480 = vadd.xlane.f32.xlu1 %v1479_v11 }
 0x980   : > { %v1414_v62 = vpop.f32.mrf.mxu0 }
 0x981   : > { %v1420_v63 = vadd.f32 %v1414_v62, %v1247_v61  ;;  %v2186_v61 = vld [vmem:[%s3452_s8] ss:$0 sm:$0xff] }
 0x982   : > { %v2362_v1 = vpop.f32.mrf.mxu0 }
 0x984   : > { %v1417_v55 = vpop.f32.mrf.mxu0 }
 0x986   : > { %v2363_v5 = vpop.f32.mrf.mxu0 }
 0x987   : > { %v2584_v5 = vld [vmem:[#allocation14 + $0x48] sm:$0xff]  }
 0x9f0   : > { %v1481_v6 = vpop.xlane.xlu1 %1480 }
 0x9f1   : > { %2604 = vrcp.f32 %v1481_v6  ;;  %v2585_v6 = vld [vmem:[#allocation14 + $0x8] sm:$0xff]  }
 0x9fe   : > { %v2605_v8 = vpop.eup %2604 }
 0x9ff   : > { %v1483_v9 = vmul.f32 %v2605_v8, %v2603_v59  ;;  %v2586_v8 = vld [vmem:[#allocation14 + $0x40] sm:$0xff]  }
 0xa01   : > { %v1484_v10 = vpack.c.bf16 %v1483_v9, %v1483_v9  ;;  %v2587_v9 = vld [vmem:[#allocation14] sm:$0xff]  }
 0xa03   : > { %2373 = vmatmul.mubr.msk.bf16.vlgmr.msra.gmra.mxu0 %vm965_vm5, %v1484_v10  ;;  %v1643_v10 = vld [vmem:[%s3455_s11] sm:$0x3] }
 0xa04   : > { %1767 = vmatprep.mubr.bf16.mxu0 %v2921_v22  ;;  %1736 = vmatpush1.bf16.msra.mxu0 %v2548_v24  ;;  %v1648_v13 = vrot.slane %v1643_v10, %v3266_v46 }
 0xa05   : > { %1737 = vmatprep.subr.bf16.mxu0 %v2553_v26 }
 0xa08   : > { %1738 = vmatpush1.bf16.msra.mxu0 %v2551_v27 }
 0xac3   : > { %v1527_v7 = vpop.f32.mrf.mxu0 }
 0xac4   : > { %v1533_v12 = vpack.c.bf16 %v1527_v7, %v1527_v7  ;;  %v1652_v7 = vrot.slane %v1643_v10, %v671_v45 }
 0xac5   : > { %v2374_v14 = vpop.f32.mrf.mxu0 }
 0xac6   : > { %2381 = vmatmul.mubr.msk.bf16.vlgmr.msra.gmra.mxu1 %vm910_vm2, %v1533_v12 }
 0xac7   : > { %v1530_v15 = vpop.f32.mrf.mxu0  ;;  %2263 = vmatpush3.bf16.msra.mxu1 %v2573_v43 }
 0xac8   : > { %2264 = vmatprep.subr.bf16.mxu1 %v2574_v44 }
 0xac9   : > { %v2375_v16 = vpop.f32.mrf.mxu0 }
 0xacb   : > { %2265 = vmatpush3.bf16.msra.mxu1 %v2575_v47 }
 0xacc   : > { %2266 = vmatprep.subr.bf16.mxu1 %v2576_v48 }
 0xacf   : > { %2267 = vmatpush3.bf16.msra.mxu1 %v2577_v49 }
 0xad0   : > { %2268 = vmatprep.subr.bf16.mxu1 %v2578_v50 }
 0xad3   : > { %2269 = vmatpush3.bf16.msra.mxu1 %v2579_v51 }
 0xad4   : > { %2270 = vmatprep.subr.bf16.mxu1 %v2580_v52 }
 0xad7   : > { %2271 = vmatpush3.bf16.msra.mxu1 %v2581_v53 }
 0xad8   : > { %2272 = vmatprep.subr.bf16.mxu1 %v2582_v54 }
 0xadb   : > { %2273 = vmatpush3.bf16.msra.mxu1 %v2583_v56 }
 0xadc   : > { %2274 = vmatprep.subr.bf16.mxu1 %v2584_v5 }
 0xadf   : > { %2275 = vmatpush3.bf16.msra.mxu1 %v2585_v6 }
 0xae0   : > { %2276 = vmatprep.subr.bf16.mxu1 %v2586_v8 }
 0xae3   : > { %2277 = vmatpush3.bf16.msra.mxu1 %v2587_v9 }
 0xb86   : > { %v1583_v17 = vpop.f32.mrf.mxu1 }
 0xb87   : > { %v1589_v3 = vadd.f32 %v1583_v17, %v1420_v63  ;;  %v2187_v63 = vld [vmem:[%s3453_s9] ss:$0 sm:$0xff] }
 0xb88   : > { %v2382_v18 = vpop.f32.mrf.mxu1 }
 0xb89   : > { %v1590_v20 = vadd.f32 %v1589_v3, %v3237_v0  ;;  %v2556_v0 = vld [vmem:[#allocation13 + $0x54] ss:$8 sps:$4 sm:$0xff]  }
 0xb8a   : > { %v1586_v21 = vpop.f32.mrf.mxu1  ;;  %1739 = vmatprep.subr.bf16.mxu0 %v2556_v0 }
 0xb8b   : > { %v3387_v22 = vadd.f32 %v2185_v19, %v1590_v20  ;;  %1740 = vmatpush1.bf16.msra.mxu0 %v2554_v2 }
 0xb8c   : > { %v2383_v23 = vpop.f32.mrf.mxu1  ;;  %1741 = vmatprep.subr.bf16.mxu0 %v2559_v33 }
 0xb8d   : > { %1601 = vadd.xlane.f32.xlu1 %v3387_v22 }
 0xb8f   : > { %1742 = vmatpush1.bf16.msra.mxu0 %v2557_v32 }
 0xb90   : > { %1743 = vmatprep.subr.bf16.mxu0 %v2562_v34 }
 0xb93   : > { %1744 = vmatpush1.bf16.msra.mxu0 %v2560_v35 }
 0xb94   : > { %1745 = vmatprep.subr.bf16.mxu0 %v2565_v36 }
 0xb97   : > { %1746 = vmatpush1.bf16.msra.mxu0 %v2563_v60 }
 0xb98   : > { %1747 = vmatprep.subr.bf16.mxu0 %v2568_v37 }
 0xb9b   : > { %1748 = vmatpush1.bf16.msra.mxu0 %v2566_v38 }
 0xb9c   : > { %1749 = vmatprep.subr.bf16.mxu0 %v2571_v39 }
 0xb9f   : > { %1750 = vmatpush1.bf16.msra.mxu0 %v2569_v40 }
 0xc16   : > { %v1602_v28 = vpop.xlane.xlu1 %1601 }
 0xc17   : > { %v1603_v29 = vmul.f32 0.0078125, %v1602_v28 }
 0xc19   : > { %v1604_v30 = vsub.f32 %v3387_v22, %v1603_v29 }
 0xc1b   : > { %v1605_v31 = vmul.f32 %v1604_v30, %v1604_v30 }
 0xc1d   : > { %1606 = vadd.xlane.f32.xlu1 %v1605_v31 }
 0xca6   : > { %v1607_v57 = vpop.xlane.xlu1 %1606 }
 0xca7   : > { %v1608_v58 = vmul.f32 0.0078125, %v1607_v57 }
 0xca9   : > { %v1609_v59 = vadd.f32 1e-06, %v1608_v58 }
 0xcab   : > { %2606 = vrsqrt.f32 %v1609_v59 }
 0xcb8   : > { %v2607_v11 = vpop.eup %2606 }
 0xcb9   : > { %v1611_v62 = vmul.f32 %v2607_v11, %v1604_v30 }
 0xcbb   : > { %v1618_v1 = vmul.f32 %v2186_v61, %v1611_v62 }
 0xcbd   : > { %v1625_v4 = vadd.f32 %v2187_v63, %v1618_v1 }
 0xcbf   : > { %v1626_v55 = vpack.c.bf16 %v1625_v4, %v1625_v4 }
 0xcc1   : > { %1768 = vmatmul.mubr.bf16.vlgmr.msra.gmra.mxu0 %v1626_v55 }
 0xd81   : > { %v1769_v12 = vpop.f32.mrf.mxu0 }
 0xd82   : > { %v1770_v14 = vadd.f32 %v1769_v12, %v1648_v13 }
 0xd83   : > { %v1771_v15 = vpop.f32.mrf.mxu0 }
 0xd84   : > { %v1772_v16 = vadd.f32 %v1771_v15, %v1652_v7  ;;  %v1776_v17 = vmax.f32 %v1770_v14, 0.0 }
 0xd85   : > { %v1773_v3 = vpop.f32.mrf.mxu0 }
 0xd86   : > { %v1777_v18 = vmax.f32 %v1772_v16, 0.0  ;;  %v1778_v21 = vpack.c.bf16 %v1776_v17, %v1776_v17 }
 0xd87   : > { %v1774_v19 = vpop.f32.mrf.mxu0 }
 0xd88   : > { %v1779_v20 = vpack.c.bf16 %v1777_v18, %v1777_v18 }
 0xd8a   : > { %1947 = vmatprep.mubr.bf16.mxu1 %v1779_v20 }
 0xd8b   : > { %1948 = vmatmul.mubr.bf16.vlgmr.msra.gmra.mxu1 %v1778_v21 }
 0xe4b   : > { %v2278_v23 = vpop.f32.mrf.mxu1 }
 0xe4d   : > { %v2279_v45 = vpop.f32.mrf.mxu1 }
 0xe4e   : > { %v2280_v46 = vadd.f32 %v2279_v45, %v2278_v23 }
 0xe4f   : > { %v2281_v24 = vpop.f32.mrf.mxu1 }
 0xe50   : > { %v1950_v25 = vadd.f32 %v2280_v46, %v2204_v42 }
 0xe51   : > { %v2282_v26 = vpop.f32.mrf.mxu1 }
 0xe52   : > { %v1955_v27 = vadd.f32 %v1950_v25, %v3387_v22 }
 0xe54   : > { %1956 = vst [vmem:[%s599_s18] sm:$0xff] %v1955_v27 }
 0xe55   : > { %2833 = shalt.err (!%p2830_p12)
}
 0xe56   : > { %s2834_s27 = scalar_lea.hbm %s1969_s4, 128  ;;  %s2838_s28 = scalar_lea.hbm %s3511_s3, 256 }
 0xe57   : > { %p2835_p4 = scmp.ne.s32.totalorder %s1969_s4, %s2834_s27  ;;  %p2839_p8 = scmp.lt.s32.totalorder %s1969_s4, %s3511_s3 }
 0xe58   : > { %p2840_p9 = scmp.lt.s32.totalorder %s2838_s28, %s2834_s27 }
 0xe59   : > { %p2836_p2 = pnand %p2835_p4, %p3512_p3 }
 0xe5a   : > { %p2841_p13 = por %p2840_p9, %p2839_p8 }
 0xe5b   : > { %p2837_p5 = pneg %p2836_p2 }
 0xe5d   : > { %p2842_p0 = pnand %p2841_p13, %p2837_p5 }
 0xe5f   : > { %2845 = shalt.err (!%p2842_p0)
}
 0xe60   : > { %2412 = dma.vmem_to_hbm [thread:$0]  (%p3512_p3), %s1972_s17, 128, %s1969_s4, %s1958_s12  }
 0xe61 PF: > { %s1983_s20 = sand.u32 1, %s2892_s29   ;;  %p3513_p10 = scmp.ne.s32.totalorder %s3495_s21, 0 }
 0xe62   : > { %p3514_p11 = scmp.ge.s32.totalorder %s2904_s16, 2  ;;  %s1984_s23 = scalar_lea.sflag [#allocation4], %s1983_s20 }
 0xe64   : > { %p2441_p1 = pnand %p3514_p11, %p3513_p10 }
 0xe66   : > { %p2442_p7 = pneg %p2441_p1 }
 0xe68   : > { %2887 = dma.done.wait (%p2442_p7), %s1984_s23, 128  }
 0xe69   : > { %2889 = vsyncadd (%p2442_p7), %s1984_s23, 4294967168  ;;  %s3515_s16 = sld [smem:[#allocation25_spill]]  ;;  %s3518_s29 = smov %s2896_s30 }
 0xe6a   : > { %s3516_s18 = sld [smem:[#allocation24_spill]] }
 0xe6b   : > { %s3517_s15 = sld [smem:[#allocation26_spill]] }
 0xe6f   : > { %p33_p6 = scmp.ge.s32.totalorder %s3515_s16, 4  }
 0xe70   : > { %s3519_s30 = smov %s3516_s18 }
 0xe71   :  { %35 = sbr.rel (!%p33_p6) target bundleno = 19 (0x13), region = 158 }
 0xe76   :  { %1989 = vsyncpa [#allocation3], 1 }
 0xe77   :  { %1991 = vsyncpa [#allocation3 + $0x1], 1 }
 0xe78   :  { %1992 = vsyncpa [#allocation6], 1 }
 0xe79   :  { %1994 = vsyncpa [#allocation6 + $0x1], 1 }
 0xe7a   :  { %1995 = vsyncpa [#allocation9], 1 }
 0xe7b   :  { %1996 = vsyncpa [#allocation12], 1 }
 0xe7c   :  { %1997 = vsyncpa [#allocation15], 1 }
 0xe7d   :  { %1998 = vsyncpa [#allocation4], 1 }
 0xe7e   :  { %2000 = vsyncpa [#allocation4 + $0x1], 1 }

</bundles_post_ra>
